<compile_context>
chip_gen: v5e
topology: v5e:2x2
jax: 0.10.0
libtpu: 0.0.40
codegen_flags: <defaults>
</compile_context>

<pallas_src>
import functools

import jax
import jax.numpy as jnp
from jax.experimental import pallas as pl
from jax.experimental.pallas import tpu as pltpu


LANE = 128
_NEG_SLOPE = 0.2
_IN_EPS = 1e-5
# Safe scoped-VMEM request on all of v5e / v6e / v7x.
_VMEM_LIMIT = 32 * 1024 * 1024


def _round_up(x, m):
    return (x + m - 1) // m * m


# ----------------------------------------------------------------------------
# Pallas kernels
# ----------------------------------------------------------------------------
def _conv_mm_bias_kernel(x_ref, w_ref, b_ref, o_ref, *, negative_slope, apply_act):
    """(bf16 patches tile @ bf16 weights) + bias (+ LeakyReLU); f32 accumulate."""
    acc = jnp.dot(x_ref[...], w_ref[...], preferred_element_type=jnp.float32)
    acc = acc + b_ref[...]
    if apply_act:
        acc = jnp.where(acc >= 0, acc, negative_slope * acc)
    o_ref[...] = acc


def _conv_mm_kernel(x_ref, w_ref, o_ref, *, negative_slope, apply_act):
    """Same as above but without the bias operand (norm layers)."""
    acc = jnp.dot(x_ref[...], w_ref[...], preferred_element_type=jnp.float32)
    if apply_act:
        acc = jnp.where(acc >= 0, acc, negative_slope * acc)
    o_ref[...] = acc


def _inorm_lrelu_kernel(x_ref, o_ref, *, eps, negative_slope):
    """InstanceNorm2d(affine=False) + LeakyReLU on a (1, H*W, C_tile) block.

    Channels live in lanes; the spatial (H*W) reduction runs over sublanes.
    """
    x = x_ref[...]
    mean = jnp.mean(x, axis=1, keepdims=True)
    xc = x - mean
    var = jnp.mean(xc * xc, axis=1, keepdims=True)     # biased var (PyTorch IN)
    y = xc * jax.lax.rsqrt(var + eps)
    o_ref[...] = jnp.where(y >= 0, y, negative_slope * y)


# ----------------------------------------------------------------------------
# Pallas wrappers
# ----------------------------------------------------------------------------
def conv_matmul(patches, w_kc, bias=None, *, apply_act, tm=256,
                negative_slope=_NEG_SLOPE):
    """patches: (M, K) f32, w_kc: (K, C_out) f32, optional bias (C_out,) f32.

    M-tiled matmul on the MXU with bf16 operand streams and f32 accumulation.
    tm=256 is a conservative default that fits v7x's smaller VMEM; 512-1024 is
    fine on v6e (128 MiB VMEM).
    """
    M, K = patches.shape
    C_out = w_kc.shape[1]

    # bf16 MXU operands (halves HBM/VMEM traffic of the dominant streams).
    patches = patches.astype(jnp.bfloat16)
    w_kc = w_kc.astype(jnp.bfloat16)

    # Row-tile: multiple of 16 (bf16 sublane packing), capped at `tm`.
    tm_eff = min(tm, _round_up(M, 16))
    m_pad = _round_up(M, tm_eff)
    if m_pad != M:
        patches = jnp.pad(patches, ((0, m_pad - M), (0, 0)))
    grid = (m_pad // tm_eff,)

    in_specs = [
        pl.BlockSpec((tm_eff, K), lambda i: (i, 0)),     # patches row tile
        pl.BlockSpec((K, C_out), lambda i: (0, 0)),      # full weight, resident
    ]
    operands = [patches, w_kc]
    if bias is not None:
        in_specs.append(pl.BlockSpec((1, C_out), lambda i: (0, 0)))
        operands.append(bias.reshape(1, C_out).astype(jnp.float32))
        kern = functools.partial(_conv_mm_bias_kernel,
                                 negative_slope=negative_slope,
                                 apply_act=apply_act)
    else:
        kern = functools.partial(_conv_mm_kernel,
                                 negative_slope=negative_slope,
                                 apply_act=apply_act)

    out = pl.pallas_call(
        kern,
        out_shape=jax.ShapeDtypeStruct((m_pad, C_out), jnp.float32),
        grid=grid,
        in_specs=in_specs,
        out_specs=pl.BlockSpec((tm_eff, C_out), lambda i: (i, 0)),
        compiler_params=pltpu.CompilerParams(
            dimension_semantics=("parallel",),
            vmem_limit_bytes=_VMEM_LIMIT),
    )(*operands)
    return out[:M] if m_pad != M else out


def instance_norm_lrelu(x, *, eps=_IN_EPS, negative_slope=_NEG_SLOPE):
    """x: (N, H, W, C) NHWC -> InstanceNorm(affine=False) + LeakyReLU."""
    N, H, W, C = x.shape
    hw = H * W
    xf = x.reshape(N, hw, C)
    # Per-channel stats are independent -> tile channels when C is lane-wide.
    tc = LANE if (C % LANE == 0) else C
    grid = (N, C // tc)
    kern = functools.partial(_inorm_lrelu_kernel, eps=eps,
                             negative_slope=negative_slope)
    y = pl.pallas_call(
        kern,
        out_shape=jax.ShapeDtypeStruct((N, hw, C), jnp.float32),
        grid=grid,
        in_specs=[pl.BlockSpec((1, hw, tc), lambda n, c: (n, 0, c))],
        out_specs=pl.BlockSpec((1, hw, tc), lambda n, c: (n, 0, c)),
        compiler_params=pltpu.CompilerParams(
            dimension_semantics=("parallel", "parallel"),
            vmem_limit_bytes=_VMEM_LIMIT),
    )(xf)
    return y.reshape(N, H, W, C)


# ----------------------------------------------------------------------------
# Glue: NHWC im2col + layer / model assembly (plain JAX, fused by XLA)
# ----------------------------------------------------------------------------
def im2col_nhwc(x, kh, kw, stride, pad):
    """x: (N, H, W, C) -> patches (N*Ho*Wo, kh*kw*C), tap-major then channel,
    matching w.transpose(2, 3, 1, 0).reshape(kh*kw*C_in, C_out)."""
    x = jnp.pad(x, ((0, 0), (pad, pad), (pad, pad), (0, 0)))
    N, H, W, C = x.shape
    ho = (H - kh) // stride + 1
    wo = (W - kw) // stride + 1
    taps = []
    for i in range(kh):
        for j in range(kw):
            taps.append(x[:, i:i + stride * ho:stride, j:j + stride * wo:stride, :])
    patches = jnp.stack(taps, axis=3)                    # (N, ho, wo, kh*kw, C)
    patches = patches.reshape(N * ho * wo, kh * kw * C)
    return patches, ho, wo


def conv_layer(x, w, b, stride, pad, *, use_act, use_norm):
    """x: (N, H, W, C_in) NHWC; w: (C_out, C_in, KH, KW) (PyTorch layout)."""
    N = x.shape[0]
    C_out, C_in, KH, KW = w.shape
    patches, ho, wo = im2col_nhwc(x, KH, KW, stride, pad)
    w_kc = jnp.transpose(w, (2, 3, 1, 0)).reshape(KH * KW * C_in, C_out)
    fuse_act = use_act and not use_norm      # act fuses into matmul if no norm
    bias = None if use_norm else b           # IN mean-subtract cancels bias
    y = conv_matmul(patches, w_kc, bias, apply_act=fuse_act)
    y = y.reshape(N, ho, wo, C_out)          # stays NHWC -- no transpose
    if use_norm:
        y = instance_norm_lrelu(y)
    return y


def discriminator_forward(x_nchw, params, *, strides):
    x = jnp.transpose(x_nchw, (0, 2, 3, 1))  # NCHW -> NHWC once at entry
    n_layers = len(params)
    for li, ((w, b), s) in enumerate(zip(params, strides)):
        first = li == 0
        last = li == n_layers - 1
        x = conv_layer(
            x, w, b, s, 1,
            use_act=not last,
            use_norm=(not first) and (not last),
        )
    return jnp.transpose(x, (0, 3, 1, 2))    # back to NCHW patch logits (tiny)


# ----------------------------------------------------------------------------
# Deterministic parameter init + run
# ----------------------------------------------------------------------------
if __name__ == "__main__":
    key = jax.random.PRNGKey(0)
    N, C_in, H, W = 2, 3, 32, 32
    ndf = 8  # small base width for the synthetic example

    # Layer channel plan (pix2pix PatchGAN, n_layers=3):
    chans = [(C_in, ndf), (ndf, ndf * 2), (ndf * 2, ndf * 4),
             (ndf * 4, ndf * 8), (ndf * 8, 1)]
    strides = (2, 2, 2, 1, 1)

    kx, *wkeys = jax.random.split(key, 1 + len(chans))
    x = jax.random.normal(kx, (N, C_in, H, W), jnp.float32)

    params = []
    for k, (ci, co) in zip(wkeys, chans):
        w = 0.02 * jax.random.normal(k, (co, ci, 4, 4), jnp.float32)  # N(0,0.02)
        b = jnp.zeros((co,), jnp.float32)
        params.append((w, b))

    fwd = jax.jit(functools.partial(discriminator_forward, strides=strides))
    out = jax.block_until_ready(fwd(x, params))

    # 32 -> 16 -> 8 -> 4 -> 3 -> 2 spatially; 1-channel patch logits.
    assert out.shape == (N, 1, 2, 2), out.shape
    assert bool(jnp.all(jnp.isfinite(out)))
    print("KERNEL_OK")
</pallas_src>

<mosaic_0001>
module attributes {stable_mosaic.version = 11 : i64} {
  func.func @_conv_mm_bias_kernel(%arg0: i32, %arg1: memref<256x48xbf16, #tpu.memory_space<vmem>>, %arg2: memref<48x8xbf16, #tpu.memory_space<vmem>>, %arg3: memref<1x8xf32, #tpu.memory_space<vmem>>, %arg4: memref<256x8xf32, #tpu.memory_space<vmem>>) attributes {dimension_semantics = [#tpu.dimension_semantics<parallel>], iteration_bounds = array<i64: 2>, scalar_prefetch = 0 : i64, scratch_operands = 0 : i64, tpu.core_type = #tpu.core_type<tc>, window_params = [{transform_indices = @transform_0, window_bounds = array<i64: 256, 48>}, {pipeline_mode = #tpu.pipeline_mode<synchronous>, transform_indices = @transform_1, window_bounds = array<i64: 48, 8>}, {pipeline_mode = #tpu.pipeline_mode<synchronous>, transform_indices = @transform_2, window_bounds = array<i64: 1, 8>}, {transform_indices = @transform_3, window_bounds = array<i64: 256, 8>}]} {
    %c0 = arith.constant 0 : index
    %c0_0 = arith.constant 0 : index
    %0 = vector.load %arg1[%c0, %c0_0] : memref<256x48xbf16, #tpu.memory_space<vmem>>, vector<256x48xbf16>
    %c0_1 = arith.constant 0 : index
    %c0_2 = arith.constant 0 : index
    %1 = vector.load %arg2[%c0_1, %c0_2] : memref<48x8xbf16, #tpu.memory_space<vmem>>, vector<48x8xbf16>
    %cst = arith.constant dense<0.000000e+00> : vector<256x8xf32>
    %2 = tpu.matmul %0, %1, %cst {dimension_numbers = #tpu.dot_dimension_numbers<[1], [0], [0], [1], [0, 0, 1, 1], [], []>} : vector<256x48xbf16>, vector<48x8xbf16>, vector<256x8xf32> -> vector<256x8xf32>
    %c0_3 = arith.constant 0 : index
    %c0_4 = arith.constant 0 : index
    %3 = vector.load %arg3[%c0_3, %c0_4] : memref<1x8xf32, #tpu.memory_space<vmem>>, vector<1x8xf32>
    %4 = vector.broadcast %3 : vector<1x8xf32> to vector<256x8xf32>
    %5 = arith.addf %2, %4 : vector<256x8xf32>
    %cst_5 = arith.constant 0.000000e+00 : f32
    %6 = vector.broadcast %cst_5 : f32 to vector<256x8xf32>
    %7 = arith.cmpf oge, %5, %6 : vector<256x8xf32>
    %cst_6 = arith.constant 2.000000e-01 : f32
    %8 = vector.broadcast %cst_6 : f32 to vector<256x8xf32>
    %9 = arith.mulf %8, %5 : vector<256x8xf32>
    %10 = arith.select %7, %5, %9 : vector<256x8xi1>, vector<256x8xf32>
    %c0_7 = arith.constant 0 : index
    %c0_8 = arith.constant 0 : index
    %11 = vector.load %arg4[%c0_7, %c0_8] : memref<256x8xf32, #tpu.memory_space<vmem>>, vector<256x8xf32>
    tpu.vector_store %arg4[%c0_7, %c0_8], %10 {strides = array<i32>} : memref<256x8xf32, #tpu.memory_space<vmem>>, vector<256x8xf32>,
    return
  }
  func.func @transform_0(%arg0: i32) -> (i32, i32) {
    %c0_i32 = arith.constant 0 : i32
    %c0_i32_0 = arith.constant 0 : i32
    return %arg0, %c0_i32 : i32, i32
  }
  func.func @transform_1(%arg0: i32) -> (i32, i32) {
    %c0_i32 = arith.constant 0 : i32
    %c0_i32_0 = arith.constant 0 : i32
    %c0_i32_1 = arith.constant 0 : i32
    return %c0_i32, %c0_i32_0 : i32, i32
  }
  func.func @transform_2(%arg0: i32) -> (i32, i32) {
    %c0_i32 = arith.constant 0 : i32
    %c0_i32_0 = arith.constant 0 : i32
    %c0_i32_1 = arith.constant 0 : i32
    return %c0_i32, %c0_i32_0 : i32, i32
  }
  func.func @transform_3(%arg0: i32) -> (i32, i32) {
    %c0_i32 = arith.constant 0 : i32
    %c0_i32_0 = arith.constant 0 : i32
    return %arg0, %c0_i32 : i32, i32
  }
}

module attributes {stable_mosaic.version = 11 : i64} {
  func.func @_conv_mm_kernel(%arg0: i32, %arg1: memref<128x128xbf16, #tpu.memory_space<vmem>>, %arg2: memref<128x16xbf16, #tpu.memory_space<vmem>>, %arg3: memref<128x16xf32, #tpu.memory_space<vmem>>) attributes {dimension_semantics = [#tpu.dimension_semantics<parallel>], iteration_bounds = array<i64: 1>, scalar_prefetch = 0 : i64, scratch_operands = 0 : i64, tpu.core_type = #tpu.core_type<tc>, window_params = [{transform_indices = @transform_0, window_bounds = array<i64: 128, 128>}, {pipeline_mode = #tpu.pipeline_mode<synchronous>, transform_indices = @transform_1, window_bounds = array<i64: 128, 16>}, {transform_indices = @transform_2, window_bounds = array<i64: 128, 16>}]} {
    %c0 = arith.constant 0 : index
    %c0_0 = arith.constant 0 : index
    %0 = vector.load %arg1[%c0, %c0_0] : memref<128x128xbf16, #tpu.memory_space<vmem>>, vector<128x128xbf16>
    %c0_1 = arith.constant 0 : index
    %c0_2 = arith.constant 0 : index
    %1 = vector.load %arg2[%c0_1, %c0_2] : memref<128x16xbf16, #tpu.memory_space<vmem>>, vector<128x16xbf16>
    %cst = arith.constant dense<0.000000e+00> : vector<128x16xf32>
    %2 = tpu.matmul %0, %1, %cst {dimension_numbers = #tpu.dot_dimension_numbers<[1], [0], [0], [1], [0, 0, 1, 1], [], []>} : vector<128x128xbf16>, vector<128x16xbf16>, vector<128x16xf32> -> vector<128x16xf32>
    %c0_3 = arith.constant 0 : index
    %c0_4 = arith.constant 0 : index
    %3 = vector.load %arg3[%c0_3, %c0_4] : memref<128x16xf32, #tpu.memory_space<vmem>>, vector<128x16xf32>
    tpu.vector_store %arg3[%c0_3, %c0_4], %2 {strides = array<i32>} : memref<128x16xf32, #tpu.memory_space<vmem>>, vector<128x16xf32>,
    return
  }
  func.func @transform_0(%arg0: i32) -> (i32, i32) {
    %c0_i32 = arith.constant 0 : i32
    %c0_i32_0 = arith.constant 0 : i32
    return %arg0, %c0_i32 : i32, i32
  }
  func.func @transform_1(%arg0: i32) -> (i32, i32) {
    %c0_i32 = arith.constant 0 : i32
    %c0_i32_0 = arith.constant 0 : i32
    %c0_i32_1 = arith.constant 0 : i32
    return %c0_i32, %c0_i32_0 : i32, i32
  }
  func.func @transform_2(%arg0: i32) -> (i32, i32) {
    %c0_i32 = arith.constant 0 : i32
    %c0_i32_0 = arith.constant 0 : i32
    return %arg0, %c0_i32 : i32, i32
  }
}

module attributes {stable_mosaic.version = 11 : i64} {
  func.func @_inorm_lrelu_kernel(%arg0: i32, %arg1: i32, %arg2: memref<1x64x16xf32, #tpu.memory_space<vmem>>, %arg3: memref<1x64x16xf32, #tpu.memory_space<vmem>>) attributes {dimension_semantics = [#tpu.dimension_semantics<parallel>, #tpu.dimension_semantics<parallel>], iteration_bounds = array<i64: 2, 1>, scalar_prefetch = 0 : i64, scratch_operands = 0 : i64, tpu.core_type = #tpu.core_type<tc>, window_params = [{transform_indices = @transform_0, window_bounds = array<i64: 1, 64, 16>}, {transform_indices = @transform_1, window_bounds = array<i64: 1, 64, 16>}]} {
    %c0 = arith.constant 0 : index
    %c0_0 = arith.constant 0 : index
    %c0_1 = arith.constant 0 : index
    %0 = vector.load %arg2[%c0, %c0_0, %c0_1] : memref<1x64x16xf32, #tpu.memory_space<vmem>>, vector<1x64x16xf32>
    %cst = arith.constant dense<0.000000e+00> : vector<1x16xf32>
    %1 = vector.multi_reduction <add>, %0, %cst [1] : vector<1x64x16xf32> to vector<1x16xf32>
    %2 = vector.shape_cast %1 : vector<1x16xf32> to vector<1x1x16xf32>
    %cst_2 = arith.constant 6.400000e+01 : f32
    %3 = vector.broadcast %cst_2 : f32 to vector<1x1x16xf32>
    %4 = arith.divf %2, %3 : vector<1x1x16xf32>
    %5 = vector.broadcast %4 : vector<1x1x16xf32> to vector<1x64x16xf32>
    %6 = arith.subf %0, %5 : vector<1x64x16xf32>
    %7 = arith.mulf %6, %6 : vector<1x64x16xf32>
    %cst_3 = arith.constant dense<0.000000e+00> : vector<1x16xf32>
    %8 = vector.multi_reduction <add>, %7, %cst_3 [1] : vector<1x64x16xf32> to vector<1x16xf32>
    %9 = vector.shape_cast %8 : vector<1x16xf32> to vector<1x1x16xf32>
    %cst_4 = arith.constant 6.400000e+01 : f32
    %10 = vector.broadcast %cst_4 : f32 to vector<1x1x16xf32>
    %11 = arith.divf %9, %10 : vector<1x1x16xf32>
    %cst_5 = arith.constant 9.99999974E-6 : f32
    %12 = vector.broadcast %cst_5 : f32 to vector<1x1x16xf32>
    %13 = arith.addf %11, %12 : vector<1x1x16xf32>
    %14 = math.rsqrt %13 : vector<1x1x16xf32>
    %15 = vector.broadcast %14 : vector<1x1x16xf32> to vector<1x64x16xf32>
    %16 = arith.mulf %6, %15 : vector<1x64x16xf32>
    %cst_6 = arith.constant 0.000000e+00 : f32
    %17 = vector.broadcast %cst_6 : f32 to vector<1x64x16xf32>
    %18 = arith.cmpf oge, %16, %17 : vector<1x64x16xf32>
    %cst_7 = arith.constant 2.000000e-01 : f32
    %19 = vector.broadcast %cst_7 : f32 to vector<1x64x16xf32>
    %20 = arith.mulf %19, %16 : vector<1x64x16xf32>
    %21 = arith.select %18, %16, %20 : vector<1x64x16xi1>, vector<1x64x16xf32>
    %c0_8 = arith.constant 0 : index
    %c0_9 = arith.constant 0 : index
    %c0_10 = arith.constant 0 : index
    %22 = vector.load %arg3[%c0_8, %c0_9, %c0_10] : memref<1x64x16xf32, #tpu.memory_space<vmem>>, vector<1x64x16xf32>
    tpu.vector_store %arg3[%c0_8, %c0_9, %c0_10], %21 {strides = array<i32>} : memref<1x64x16xf32, #tpu.memory_space<vmem>>, vector<1x64x16xf32>,
    return
  }
  func.func @transform_0(%arg0: i32, %arg1: i32) -> (i32, i32, i32) {
    %c0_i32 = arith.constant 0 : i32
    %c0_i32_0 = arith.constant 0 : i32
    return %arg0, %c0_i32, %arg1 : i32, i32, i32
  }
  func.func @transform_1(%arg0: i32, %arg1: i32) -> (i32, i32, i32) {
    %c0_i32 = arith.constant 0 : i32
    %c0_i32_0 = arith.constant 0 : i32
    return %arg0, %c0_i32, %arg1 : i32, i32, i32
  }
}

module attributes {stable_mosaic.version = 11 : i64} {
  func.func @_conv_mm_kernel(%arg0: i32, %arg1: memref<32x256xbf16, #tpu.memory_space<vmem>>, %arg2: memref<256x32xbf16, #tpu.memory_space<vmem>>, %arg3: memref<32x32xf32, #tpu.memory_space<vmem>>) attributes {dimension_semantics = [#tpu.dimension_semantics<parallel>], iteration_bounds = array<i64: 1>, scalar_prefetch = 0 : i64, scratch_operands = 0 : i64, tpu.core_type = #tpu.core_type<tc>, window_params = [{transform_indices = @transform_0, window_bounds = array<i64: 32, 256>}, {pipeline_mode = #tpu.pipeline_mode<synchronous>, transform_indices = @transform_1, window_bounds = array<i64: 256, 32>}, {transform_indices = @transform_2, window_bounds = array<i64: 32, 32>}]} {
    %c0 = arith.constant 0 : index
    %c0_0 = arith.constant 0 : index
    %0 = vector.load %arg1[%c0, %c0_0] : memref<32x256xbf16, #tpu.memory_space<vmem>>, vector<32x256xbf16>
    %c0_1 = arith.constant 0 : index
    %c0_2 = arith.constant 0 : index
    %1 = vector.load %arg2[%c0_1, %c0_2] : memref<256x32xbf16, #tpu.memory_space<vmem>>, vector<256x32xbf16>
    %cst = arith.constant dense<0.000000e+00> : vector<32x32xf32>
    %2 = tpu.matmul %0, %1, %cst {dimension_numbers = #tpu.dot_dimension_numbers<[1], [0], [0], [1], [0, 0, 1, 1], [], []>} : vector<32x256xbf16>, vector<256x32xbf16>, vector<32x32xf32> -> vector<32x32xf32>
    %c0_3 = arith.constant 0 : index
    %c0_4 = arith.constant 0 : index
    %3 = vector.load %arg3[%c0_3, %c0_4] : memref<32x32xf32, #tpu.memory_space<vmem>>, vector<32x32xf32>
    tpu.vector_store %arg3[%c0_3, %c0_4], %2 {strides = array<i32>} : memref<32x32xf32, #tpu.memory_space<vmem>>, vector<32x32xf32>,
    return
  }
  func.func @transform_0(%arg0: i32) -> (i32, i32) {
    %c0_i32 = arith.constant 0 : i32
    %c0_i32_0 = arith.constant 0 : i32
    return %arg0, %c0_i32 : i32, i32
  }
  func.func @transform_1(%arg0: i32) -> (i32, i32) {
    %c0_i32 = arith.constant 0 : i32
    %c0_i32_0 = arith.constant 0 : i32
    %c0_i32_1 = arith.constant 0 : i32
    return %c0_i32, %c0_i32_0 : i32, i32
  }
  func.func @transform_2(%arg0: i32) -> (i32, i32) {
    %c0_i32 = arith.constant 0 : i32
    %c0_i32_0 = arith.constant 0 : i32
    return %arg0, %c0_i32 : i32, i32
  }
}

module attributes {stable_mosaic.version = 11 : i64} {
  func.func @_inorm_lrelu_kernel(%arg0: i32, %arg1: i32, %arg2: memref<1x16x32xf32, #tpu.memory_space<vmem>>, %arg3: memref<1x16x32xf32, #tpu.memory_space<vmem>>) attributes {dimension_semantics = [#tpu.dimension_semantics<parallel>, #tpu.dimension_semantics<parallel>], iteration_bounds = array<i64: 2, 1>, scalar_prefetch = 0 : i64, scratch_operands = 0 : i64, tpu.core_type = #tpu.core_type<tc>, window_params = [{transform_indices = @transform_0, window_bounds = array<i64: 1, 16, 32>}, {transform_indices = @transform_1, window_bounds = array<i64: 1, 16, 32>}]} {
    %c0 = arith.constant 0 : index
    %c0_0 = arith.constant 0 : index
    %c0_1 = arith.constant 0 : index
    %0 = vector.load %arg2[%c0, %c0_0, %c0_1] : memref<1x16x32xf32, #tpu.memory_space<vmem>>, vector<1x16x32xf32>
    %cst = arith.constant dense<0.000000e+00> : vector<1x32xf32>
    %1 = vector.multi_reduction <add>, %0, %cst [1] : vector<1x16x32xf32> to vector<1x32xf32>
    %2 = vector.shape_cast %1 : vector<1x32xf32> to vector<1x1x32xf32>
    %cst_2 = arith.constant 1.600000e+01 : f32
    %3 = vector.broadcast %cst_2 : f32 to vector<1x1x32xf32>
    %4 = arith.divf %2, %3 : vector<1x1x32xf32>
    %5 = vector.broadcast %4 : vector<1x1x32xf32> to vector<1x16x32xf32>
    %6 = arith.subf %0, %5 : vector<1x16x32xf32>
    %7 = arith.mulf %6, %6 : vector<1x16x32xf32>
    %cst_3 = arith.constant dense<0.000000e+00> : vector<1x32xf32>
    %8 = vector.multi_reduction <add>, %7, %cst_3 [1] : vector<1x16x32xf32> to vector<1x32xf32>
    %9 = vector.shape_cast %8 : vector<1x32xf32> to vector<1x1x32xf32>
    %cst_4 = arith.constant 1.600000e+01 : f32
    %10 = vector.broadcast %cst_4 : f32 to vector<1x1x32xf32>
    %11 = arith.divf %9, %10 : vector<1x1x32xf32>
    %cst_5 = arith.constant 9.99999974E-6 : f32
    %12 = vector.broadcast %cst_5 : f32 to vector<1x1x32xf32>
    %13 = arith.addf %11, %12 : vector<1x1x32xf32>
    %14 = math.rsqrt %13 : vector<1x1x32xf32>
    %15 = vector.broadcast %14 : vector<1x1x32xf32> to vector<1x16x32xf32>
    %16 = arith.mulf %6, %15 : vector<1x16x32xf32>
    %cst_6 = arith.constant 0.000000e+00 : f32
    %17 = vector.broadcast %cst_6 : f32 to vector<1x16x32xf32>
    %18 = arith.cmpf oge, %16, %17 : vector<1x16x32xf32>
    %cst_7 = arith.constant 2.000000e-01 : f32
    %19 = vector.broadcast %cst_7 : f32 to vector<1x16x32xf32>
    %20 = arith.mulf %19, %16 : vector<1x16x32xf32>
    %21 = arith.select %18, %16, %20 : vector<1x16x32xi1>, vector<1x16x32xf32>
    %c0_8 = arith.constant 0 : index
    %c0_9 = arith.constant 0 : index
    %c0_10 = arith.constant 0 : index
    %22 = vector.load %arg3[%c0_8, %c0_9, %c0_10] : memref<1x16x32xf32, #tpu.memory_space<vmem>>, vector<1x16x32xf32>
    tpu.vector_store %arg3[%c0_8, %c0_9, %c0_10], %21 {strides = array<i32>} : memref<1x16x32xf32, #tpu.memory_space<vmem>>, vector<1x16x32xf32>,
    return
  }
  func.func @transform_0(%arg0: i32, %arg1: i32) -> (i32, i32, i32) {
    %c0_i32 = arith.constant 0 : i32
    %c0_i32_0 = arith.constant 0 : i32
    return %arg0, %c0_i32, %arg1 : i32, i32, i32
  }
  func.func @transform_1(%arg0: i32, %arg1: i32) -> (i32, i32, i32) {
    %c0_i32 = arith.constant 0 : i32
    %c0_i32_0 = arith.constant 0 : i32
    return %arg0, %c0_i32, %arg1 : i32, i32, i32
  }
}

module attributes {stable_mosaic.version = 11 : i64} {
  func.func @_conv_mm_kernel(%arg0: i32, %arg1: memref<32x512xbf16, #tpu.memory_space<vmem>>, %arg2: memref<512x64xbf16, #tpu.memory_space<vmem>>, %arg3: memref<32x64xf32, #tpu.memory_space<vmem>>) attributes {dimension_semantics = [#tpu.dimension_semantics<parallel>], iteration_bounds = array<i64: 1>, scalar_prefetch = 0 : i64, scratch_operands = 0 : i64, tpu.core_type = #tpu.core_type<tc>, window_params = [{transform_indices = @transform_0, window_bounds = array<i64: 32, 512>}, {pipeline_mode = #tpu.pipeline_mode<synchronous>, transform_indices = @transform_1, window_bounds = array<i64: 512, 64>}, {transform_indices = @transform_2, window_bounds = array<i64: 32, 64>}]} {
    %c0 = arith.constant 0 : index
    %c0_0 = arith.constant 0 : index
    %0 = vector.load %arg1[%c0, %c0_0] : memref<32x512xbf16, #tpu.memory_space<vmem>>, vector<32x512xbf16>
    %c0_1 = arith.constant 0 : index
    %c0_2 = arith.constant 0 : index
    %1 = vector.load %arg2[%c0_1, %c0_2] : memref<512x64xbf16, #tpu.memory_space<vmem>>, vector<512x64xbf16>
    %cst = arith.constant dense<0.000000e+00> : vector<32x64xf32>
    %2 = tpu.matmul %0, %1, %cst {dimension_numbers = #tpu.dot_dimension_numbers<[1], [0], [0], [1], [0, 0, 1, 1], [], []>} : vector<32x512xbf16>, vector<512x64xbf16>, vector<32x64xf32> -> vector<32x64xf32>
    %c0_3 = arith.constant 0 : index
    %c0_4 = arith.constant 0 : index
    %3 = vector.load %arg3[%c0_3, %c0_4] : memref<32x64xf32, #tpu.memory_space<vmem>>, vector<32x64xf32>
    tpu.vector_store %arg3[%c0_3, %c0_4], %2 {strides = array<i32>} : memref<32x64xf32, #tpu.memory_space<vmem>>, vector<32x64xf32>,
    return
  }
  func.func @transform_0(%arg0: i32) -> (i32, i32) {
    %c0_i32 = arith.constant 0 : i32
    %c0_i32_0 = arith.constant 0 : i32
    return %arg0, %c0_i32 : i32, i32
  }
  func.func @transform_1(%arg0: i32) -> (i32, i32) {
    %c0_i32 = arith.constant 0 : i32
    %c0_i32_0 = arith.constant 0 : i32
    %c0_i32_1 = arith.constant 0 : i32
    return %c0_i32, %c0_i32_0 : i32, i32
  }
  func.func @transform_2(%arg0: i32) -> (i32, i32) {
    %c0_i32 = arith.constant 0 : i32
    %c0_i32_0 = arith.constant 0 : i32
    return %arg0, %c0_i32 : i32, i32
  }
}

module attributes {stable_mosaic.version = 11 : i64} {
  func.func @_inorm_lrelu_kernel(%arg0: i32, %arg1: i32, %arg2: memref<1x9x64xf32, #tpu.memory_space<vmem>>, %arg3: memref<1x9x64xf32, #tpu.memory_space<vmem>>) attributes {dimension_semantics = [#tpu.dimension_semantics<parallel>, #tpu.dimension_semantics<parallel>], iteration_bounds = array<i64: 2, 1>, scalar_prefetch = 0 : i64, scratch_operands = 0 : i64, tpu.core_type = #tpu.core_type<tc>, window_params = [{transform_indices = @transform_0, window_bounds = array<i64: 1, 9, 64>}, {transform_indices = @transform_1, window_bounds = array<i64: 1, 9, 64>}]} {
    %c0 = arith.constant 0 : index
    %c0_0 = arith.constant 0 : index
    %c0_1 = arith.constant 0 : index
    %0 = vector.load %arg2[%c0, %c0_0, %c0_1] : memref<1x9x64xf32, #tpu.memory_space<vmem>>, vector<1x9x64xf32>
    %cst = arith.constant dense<0.000000e+00> : vector<1x64xf32>
    %1 = vector.multi_reduction <add>, %0, %cst [1] : vector<1x9x64xf32> to vector<1x64xf32>
    %2 = vector.shape_cast %1 : vector<1x64xf32> to vector<1x1x64xf32>
    %cst_2 = arith.constant 9.000000e+00 : f32
    %3 = vector.broadcast %cst_2 : f32 to vector<1x1x64xf32>
    %4 = arith.divf %2, %3 : vector<1x1x64xf32>
    %5 = vector.broadcast %4 : vector<1x1x64xf32> to vector<1x9x64xf32>
    %6 = arith.subf %0, %5 : vector<1x9x64xf32>
    %7 = arith.mulf %6, %6 : vector<1x9x64xf32>
    %cst_3 = arith.constant dense<0.000000e+00> : vector<1x64xf32>
    %8 = vector.multi_reduction <add>, %7, %cst_3 [1] : vector<1x9x64xf32> to vector<1x64xf32>
    %9 = vector.shape_cast %8 : vector<1x64xf32> to vector<1x1x64xf32>
    %cst_4 = arith.constant 9.000000e+00 : f32
    %10 = vector.broadcast %cst_4 : f32 to vector<1x1x64xf32>
    %11 = arith.divf %9, %10 : vector<1x1x64xf32>
    %cst_5 = arith.constant 9.99999974E-6 : f32
    %12 = vector.broadcast %cst_5 : f32 to vector<1x1x64xf32>
    %13 = arith.addf %11, %12 : vector<1x1x64xf32>
    %14 = math.rsqrt %13 : vector<1x1x64xf32>
    %15 = vector.broadcast %14 : vector<1x1x64xf32> to vector<1x9x64xf32>
    %16 = arith.mulf %6, %15 : vector<1x9x64xf32>
    %cst_6 = arith.constant 0.000000e+00 : f32
    %17 = vector.broadcast %cst_6 : f32 to vector<1x9x64xf32>
    %18 = arith.cmpf oge, %16, %17 : vector<1x9x64xf32>
    %cst_7 = arith.constant 2.000000e-01 : f32
    %19 = vector.broadcast %cst_7 : f32 to vector<1x9x64xf32>
    %20 = arith.mulf %19, %16 : vector<1x9x64xf32>
    %21 = arith.select %18, %16, %20 : vector<1x9x64xi1>, vector<1x9x64xf32>
    %c0_8 = arith.constant 0 : index
    %c0_9 = arith.constant 0 : index
    %c0_10 = arith.constant 0 : index
    %22 = vector.load %arg3[%c0_8, %c0_9, %c0_10] : memref<1x9x64xf32, #tpu.memory_space<vmem>>, vector<1x9x64xf32>
    tpu.vector_store %arg3[%c0_8, %c0_9, %c0_10], %21 {strides = array<i32>} : memref<1x9x64xf32, #tpu.memory_space<vmem>>, vector<1x9x64xf32>,
    return
  }
  func.func @transform_0(%arg0: i32, %arg1: i32) -> (i32, i32, i32) {
    %c0_i32 = arith.constant 0 : i32
    %c0_i32_0 = arith.constant 0 : i32
    return %arg0, %c0_i32, %arg1 : i32, i32, i32
  }
  func.func @transform_1(%arg0: i32, %arg1: i32) -> (i32, i32, i32) {
    %c0_i32 = arith.constant 0 : i32
    %c0_i32_0 = arith.constant 0 : i32
    return %arg0, %c0_i32, %arg1 : i32, i32, i32
  }
}

module attributes {stable_mosaic.version = 11 : i64} {
  func.func @_conv_mm_bias_kernel(%arg0: i32, %arg1: memref<16x1024xbf16, #tpu.memory_space<vmem>>, %arg2: memref<1024x1xbf16, #tpu.memory_space<vmem>>, %arg3: memref<1x1xf32, #tpu.memory_space<vmem>>, %arg4: memref<16x1xf32, #tpu.memory_space<vmem>>) attributes {dimension_semantics = [#tpu.dimension_semantics<parallel>], iteration_bounds = array<i64: 1>, scalar_prefetch = 0 : i64, scratch_operands = 0 : i64, tpu.core_type = #tpu.core_type<tc>, window_params = [{transform_indices = @transform_0, window_bounds = array<i64: 16, 1024>}, {pipeline_mode = #tpu.pipeline_mode<synchronous>, transform_indices = @transform_1, window_bounds = array<i64: 1024, 1>}, {pipeline_mode = #tpu.pipeline_mode<synchronous>, transform_indices = @transform_2, window_bounds = array<i64: 1, 1>}, {transform_indices = @transform_3, window_bounds = array<i64: 16, 1>}]} {
    %c0 = arith.constant 0 : index
    %c0_0 = arith.constant 0 : index
    %0 = vector.load %arg1[%c0, %c0_0] : memref<16x1024xbf16, #tpu.memory_space<vmem>>, vector<16x1024xbf16>
    %c0_1 = arith.constant 0 : index
    %c0_2 = arith.constant 0 : index
    %1 = vector.load %arg2[%c0_1, %c0_2] : memref<1024x1xbf16, #tpu.memory_space<vmem>>, vector<1024x1xbf16>
    %cst = arith.constant dense<0.000000e+00> : vector<16x1xf32>
    %2 = tpu.matmul %0, %1, %cst {dimension_numbers = #tpu.dot_dimension_numbers<[1], [0], [0], [1], [0, 0, 1, 1], [], []>} : vector<16x1024xbf16>, vector<1024x1xbf16>, vector<16x1xf32> -> vector<16x1xf32>
    %c0_3 = arith.constant 0 : index
    %c0_4 = arith.constant 0 : index
    %3 = vector.load %arg3[%c0_3, %c0_4] : memref<1x1xf32, #tpu.memory_space<vmem>>, vector<1x1xf32>
    %4 = vector.broadcast %3 : vector<1x1xf32> to vector<16x1xf32>
    %5 = arith.addf %2, %4 : vector<16x1xf32>
    %c0_5 = arith.constant 0 : index
    %c0_6 = arith.constant 0 : index
    %6 = vector.load %arg4[%c0_5, %c0_6] : memref<16x1xf32, #tpu.memory_space<vmem>>, vector<16x1xf32>
    tpu.vector_store %arg4[%c0_5, %c0_6], %5 {strides = array<i32>} : memref<16x1xf32, #tpu.memory_space<vmem>>, vector<16x1xf32>,
    return
  }
  func.func @transform_0(%arg0: i32) -> (i32, i32) {
    %c0_i32 = arith.constant 0 : i32
    %c0_i32_0 = arith.constant 0 : i32
    return %arg0, %c0_i32 : i32, i32
  }
  func.func @transform_1(%arg0: i32) -> (i32, i32) {
    %c0_i32 = arith.constant 0 : i32
    %c0_i32_0 = arith.constant 0 : i32
    %c0_i32_1 = arith.constant 0 : i32
    return %c0_i32, %c0_i32_0 : i32, i32
  }
  func.func @transform_2(%arg0: i32) -> (i32, i32) {
    %c0_i32 = arith.constant 0 : i32
    %c0_i32_0 = arith.constant 0 : i32
    %c0_i32_1 = arith.constant 0 : i32
    return %c0_i32, %c0_i32_0 : i32, i32
  }
  func.func @transform_3(%arg0: i32) -> (i32, i32) {
    %c0_i32 = arith.constant 0 : i32
    %c0_i32_0 = arith.constant 0 : i32
    return %arg0, %c0_i32 : i32, i32
  }
}

</mosaic_0001>

<bundles_post_ra>
// kernel: discriminator_forward.8
= control target key start
LH: loop header
LB: loop body
LE: loop exit
PB: predicated region body
PF: predicated region fallthrough
CT: control target
= control target key end

     0   :  { %s806_s12 = smov 0   ;;  %s973_s0 = inlined_call_operand.vmem [shape: bf16[512,48], index: 0, kind: input, shape index: {}]   ;;  %s974_s1 = inlined_call_operand.vmem [shape: bf16[48,8], index: 1, kind: input, shape index: {}]   ;;  %s975_s2 = inlined_call_operand.vmem [shape: f32[1,8], index: 2, kind: input, shape index: {}]   ;;  %s976_s3 = inlined_call_operand.vmem [shape: f32[512,8], index: 3, kind: output, shape index: {}]  }
   0x1 LB: > { %s638_s13 = sadd.s32 4294967295, %s784_s12   ;;  %p642_p0 = scmp.ge.s32.totalorder %s784_s12, 1  ;;  %s784_s12 = sphi %s806_s12, %s13_s12  }
   0x2   : > { %p138_p1 = scmp.lt.s32.totalorder %s784_s12, 3 }
   0x4   : > { %p139_p2 = pnand %p642_p0, %p138_p1 }
   0x5   : > { %s643_s16 = sshll.u32 (!%p139_p2), %s638_s13, 5 }
   0x6   : > { %142 = sbr.rel (%p139_p2) target bundleno = 219 (0xdb), region = 32  ;;  %p163_p3 = scmp.lt.s32.totalorder (!%p139_p2), %s643_s16, 63 }
   0xb   : > { %v759_v0 = vld [vmem:[%s974_s1 + $0x10] sm:$0xff]  ;;  %v758_v1 = vld [vmem:[%s974_s1 + $0x8] sm:$0xff]  ;;  %s978_s16 = smov (!%p163_p3, %s643_s16), 63  ;;  %v757_v2 = vld [vmem:[%s974_s1] sm:$0xff]  ;;  %vm315_vm0 = vcmask 392192   ;;  %vm549_vm1 = vcmask 64512  }
   0xc   : > { %369 = vmatpush.bf16.msra.mxu0 %v759_v0  ;;  %760 = vmatpush.bf16.msra.mxu1 %v759_v0  ;;  %s644_s19 = sshll.u32 %s978_s16, 2  ;;  %v866_v19 = vld [vmem:[%s975_s2] ss:$0 sm:$0xff]  ;;  %s646_s27 = sshll.u32 %s978_s16, 3 }
   0xd   : > { %761 = vmatpush.bf16.msra.mxu2 %v759_v0  ;;  %762 = vmatpush.bf16.msra.mxu3 %v759_v0  ;;  %s829_s24 = scalar_lea.vmem %s973_s0, %s644_s19  ;;  %s874_s30 = scalar_lea.vmem %s976_s3, %s646_s27 }
   0xe   : > { %v741_v3 = vld [vmem:[%s829_s24] sm:$0xff]  ;;  %v742_v7 = vld [vmem:[%s829_s24 + $0x8] sm:$0xff]  ;;  %v743_v11 = vld [vmem:[%s829_s24 + $0x10] sm:$0xff] }
   0xf   : > { %v745_v4 = vld [vmem:[%s829_s24 + $0x20] sm:$0xff]  ;;  %v746_v8 = vld [vmem:[%s829_s24 + $0x28] sm:$0xff]  ;;  %v747_v12 = vld [vmem:[%s829_s24 + $0x30] sm:$0xff] }
  0x10   : > { %370 = vmatpush.bf16.msra.mxu0 %v758_v1  ;;  %763 = vmatpush.bf16.msra.mxu1 %v758_v1  ;;  %v749_v5 = vld [vmem:[%s829_s24 + $0x40] sm:$0xff]  ;;  %v750_v9 = vld [vmem:[%s829_s24 + $0x48] sm:$0xff]  ;;  %v751_v13 = vld [vmem:[%s829_s24 + $0x50] sm:$0xff] }
  0x11   : > { %764 = vmatpush.bf16.msra.mxu2 %v758_v1  ;;  %765 = vmatpush.bf16.msra.mxu3 %v758_v1  ;;  %v753_v6 = vld [vmem:[%s829_s24 + $0x60] sm:$0xff]  ;;  %v754_v10 = vld [vmem:[%s829_s24 + $0x68] sm:$0xff]  ;;  %v755_v14 = vld [vmem:[%s829_s24 + $0x70] sm:$0xff] }
  0x12   : > { %v744_v15 = vld [vmem:[%s829_s24 + $0x18] sm:$0xff] }
  0x13   : > { %v748_v16 = vld [vmem:[%s829_s24 + $0x38] sm:$0xff] }
  0x14   : > { %371 = vmatpush.bf16.msra.mxu0 %v757_v2  ;;  %766 = vmatpush.bf16.msra.mxu1 %v757_v2  ;;  %v752_v17 = vld [vmem:[%s829_s24 + $0x58] sm:$0xff] }
  0x15   : > { %767 = vmatpush.bf16.msra.mxu2 %v757_v2  ;;  %768 = vmatpush.bf16.msra.mxu3 %v757_v2  ;;  %v756_v18 = vld [vmem:[%s829_s24 + $0x78] sm:$0xff] }
  0x17   : > { %723 = vmatmul.msk.bf16.vlgmr.msra.gmra.mxu0 %vm315_vm0, %v741_v3  ;;  %727 = vmatmul.msk.bf16.vlgmr.msra.gmra.mxu1 %vm315_vm0, %v745_v4 }
  0x18   : > { %731 = vmatmul.msk.bf16.vlgmr.msra.gmra.mxu2 %vm315_vm0, %v749_v5  ;;  %735 = vmatmul.msk.bf16.vlgmr.msra.gmra.mxu3 %vm315_vm0, %v753_v6 }
  0x27   : > { %724 = vmatmul.msk.bf16.gmra.mxu0 %vm315_vm0, %v742_v7  ;;  %728 = vmatmul.msk.bf16.gmra.mxu1 %vm315_vm0, %v746_v8 }
  0x28   : > { %732 = vmatmul.msk.bf16.gmra.mxu2 %vm315_vm0, %v750_v9  ;;  %736 = vmatmul.msk.bf16.gmra.mxu3 %vm315_vm0, %v754_v10 }
  0x37   : > { %725 = vmatmul.msk.bf16.gmra.mxu0 %vm315_vm0, %v743_v11  ;;  %729 = vmatmul.msk.bf16.gmra.mxu1 %vm315_vm0, %v747_v12 }
  0x38   : > { %733 = vmatmul.msk.bf16.gmra.mxu2 %vm315_vm0, %v751_v13  ;;  %737 = vmatmul.msk.bf16.gmra.mxu3 %vm315_vm0, %v755_v14 }
  0x47   : > { %726 = vmatmul.msk.bf16.gmra.mxu0 %vm315_vm0, %v744_v15  ;;  %730 = vmatmul.msk.bf16.gmra.mxu1 %vm315_vm0, %v748_v16 }
  0x48   : > { %734 = vmatmul.msk.bf16.gmra.mxu2 %vm315_vm0, %v752_v17  ;;  %738 = vmatmul.msk.bf16.gmra.mxu3 %vm315_vm0, %v756_v18 }
  0x94   : > { %v373_v20 = vpop.f32.mrf.mxu0  ;;  %v393_v21 = vpop.f32.mrf.mxu1 }
  0x95   : > { %v374_v22 = vadd.f32 %v866_v19, %v373_v20  ;;  %v394_v23 = vadd.f32 %v866_v19, %v393_v21 }
  0x97   : > { %vm453_vm2 = vcmp.ge.f32.partialorder %v374_v22, 0.0  ;;  %v485_v24 = vmul.f32 0.2, %v374_v22  ;;  %vm461_vm3 = vcmp.ge.f32.partialorder %v394_v23, 0.0  ;;  %v493_v25 = vmul.f32 0.2, %v394_v23 }
  0x99   : > { %v517_v26 = vsel %vm453_vm2, %v374_v22, %v485_v24  ;;  %v525_v27 = vsel %vm461_vm3, %v394_v23, %v493_v25 }
  0x9a   : > { %550 = vst.msk [vmem:[%s874_s30] sm:$0xff] %vm549_vm1, %v517_v26 }
  0x9b   : > { %558 = vst.msk [vmem:[%s874_s30 + $0x40] sm:$0xff] %vm549_vm1, %v525_v27  ;;  %v413_v28 = vpop.f32.mrf.mxu2  ;;  %v433_v29 = vpop.f32.mrf.mxu3 }
  0x9c   : > { %v414_v30 = vadd.f32 %v866_v19, %v413_v28  ;;  %v434_v31 = vadd.f32 %v866_v19, %v433_v29  ;;  %v375_v32 = vpop.f32.mrf.mxu0  ;;  %v395_v33 = vpop.f32.mrf.mxu1 }
  0x9d   : > { %v376_v34 = vadd.f32 %v866_v19, %v375_v32  ;;  %v396_v35 = vadd.f32 %v866_v19, %v395_v33 }
  0x9e   : > { %vm469_vm4 = vcmp.ge.f32.partialorder %v414_v30, 0.0  ;;  %v501_v36 = vmul.f32 0.2, %v414_v30  ;;  %vm477_vm5 = vcmp.ge.f32.partialorder %v434_v31, 0.0  ;;  %v509_v37 = vmul.f32 0.2, %v434_v31 }
  0x9f   : > { %vm454_vm6 = vcmp.ge.f32.partialorder %v376_v34, 0.0  ;;  %v486_v38 = vmul.f32 0.2, %v376_v34  ;;  %vm462_vm7 = vcmp.ge.f32.partialorder %v396_v35, 0.0  ;;  %v494_v39 = vmul.f32 0.2, %v396_v35 }
  0xa0   : > { %v533_v40 = vsel %vm469_vm4, %v414_v30, %v501_v36  ;;  %v541_v41 = vsel %vm477_vm5, %v434_v31, %v509_v37 }
  0xa1   : > { %566 = vst.msk [vmem:[%s874_s30 + $0x80] sm:$0xff] %vm549_vm1, %v533_v40  ;;  %v518_v42 = vsel %vm454_vm6, %v376_v34, %v486_v38  ;;  %v526_v43 = vsel %vm462_vm7, %v396_v35, %v494_v39 }
  0xa2   : > { %574 = vst.msk [vmem:[%s874_s30 + $0xc0] sm:$0xff] %vm549_vm1, %v541_v41 }
  0xa3   : > { %551 = vst.msk [vmem:[%s874_s30 + $0x8] sm:$0xff] %vm549_vm1, %v518_v42  ;;  %v415_v44 = vpop.f32.mrf.mxu2  ;;  %v435_v45 = vpop.f32.mrf.mxu3 }
  0xa4   : > { %559 = vst.msk [vmem:[%s874_s30 + $0x48] sm:$0xff] %vm549_vm1, %v526_v43  ;;  %v416_v46 = vadd.f32 %v866_v19, %v415_v44  ;;  %v436_v47 = vadd.f32 %v866_v19, %v435_v45  ;;  %v378_v48 = vpop.f32.mrf.mxu0  ;;  %v398_v49 = vpop.f32.mrf.mxu1 }
  0xa5   : > { %v379_v50 = vadd.f32 %v866_v19, %v378_v48  ;;  %v399_v51 = vadd.f32 %v866_v19, %v398_v49 }
  0xa6   : > { %vm470_vm8 = vcmp.ge.f32.partialorder %v416_v46, 0.0  ;;  %v502_v52 = vmul.f32 0.2, %v416_v46  ;;  %vm478_vm9 = vcmp.ge.f32.partialorder %v436_v47, 0.0  ;;  %v510_v53 = vmul.f32 0.2, %v436_v47 }
  0xa7   : > { %vm455_vm10 = vcmp.ge.f32.partialorder %v379_v50, 0.0  ;;  %v487_v54 = vmul.f32 0.2, %v379_v50  ;;  %vm463_vm11 = vcmp.ge.f32.partialorder %v399_v51, 0.0  ;;  %v495_v55 = vmul.f32 0.2, %v399_v51 }
  0xa8   : > { %v534_v56 = vsel %vm470_vm8, %v416_v46, %v502_v52  ;;  %v542_v57 = vsel %vm478_vm9, %v436_v47, %v510_v53 }
  0xa9   : > { %567 = vst.msk [vmem:[%s874_s30 + $0x88] sm:$0xff] %vm549_vm1, %v534_v56  ;;  %v519_v58 = vsel %vm455_vm10, %v379_v50, %v487_v54  ;;  %v527_v59 = vsel %vm463_vm11, %v399_v51, %v495_v55 }
  0xaa   : > { %575 = vst.msk [vmem:[%s874_s30 + $0xc8] sm:$0xff] %vm549_vm1, %v542_v57 }
  0xab   : > { %552 = vst.msk [vmem:[%s874_s30 + $0x10] sm:$0xff] %vm549_vm1, %v519_v58  ;;  %v418_v60 = vpop.f32.mrf.mxu2  ;;  %v438_v61 = vpop.f32.mrf.mxu3 }
  0xac   : > { %560 = vst.msk [vmem:[%s874_s30 + $0x50] sm:$0xff] %vm549_vm1, %v527_v59  ;;  %v419_v62 = vadd.f32 %v866_v19, %v418_v60  ;;  %v439_v63 = vadd.f32 %v866_v19, %v438_v61  ;;  %v380_v0 = vpop.f32.mrf.mxu0  ;;  %v400_v1 = vpop.f32.mrf.mxu1 }
  0xad   : > { %v381_v2 = vadd.f32 %v866_v19, %v380_v0  ;;  %v401_v3 = vadd.f32 %v866_v19, %v400_v1 }
  0xae   : > { %vm471_vm12 = vcmp.ge.f32.partialorder %v419_v62, 0.0  ;;  %v503_v4 = vmul.f32 0.2, %v419_v62  ;;  %vm479_vm13 = vcmp.ge.f32.partialorder %v439_v63, 0.0  ;;  %v511_v5 = vmul.f32 0.2, %v439_v63 }
  0xaf   : > { %vm456_vm14 = vcmp.ge.f32.partialorder %v381_v2, 0.0  ;;  %v488_v6 = vmul.f32 0.2, %v381_v2  ;;  %vm464_vm15 = vcmp.ge.f32.partialorder %v401_v3, 0.0  ;;  %v496_v7 = vmul.f32 0.2, %v401_v3 }
  0xb0   : > { %v535_v8 = vsel %vm471_vm12, %v419_v62, %v503_v4  ;;  %v543_v9 = vsel %vm479_vm13, %v439_v63, %v511_v5 }
  0xb1   : > { %568 = vst.msk [vmem:[%s874_s30 + $0x90] sm:$0xff] %vm549_vm1, %v535_v8  ;;  %v520_v10 = vsel %vm456_vm14, %v381_v2, %v488_v6  ;;  %v528_v11 = vsel %vm464_vm15, %v401_v3, %v496_v7 }
  0xb2   : > { %576 = vst.msk [vmem:[%s874_s30 + $0xd0] sm:$0xff] %vm549_vm1, %v543_v9 }
  0xb3   : > { %553 = vst.msk [vmem:[%s874_s30 + $0x18] sm:$0xff] %vm549_vm1, %v520_v10  ;;  %v420_v12 = vpop.f32.mrf.mxu2  ;;  %v440_v13 = vpop.f32.mrf.mxu3 }
  0xb4   : > { %561 = vst.msk [vmem:[%s874_s30 + $0x58] sm:$0xff] %vm549_vm1, %v528_v11  ;;  %v421_v14 = vadd.f32 %v866_v19, %v420_v12  ;;  %v441_v15 = vadd.f32 %v866_v19, %v440_v13  ;;  %v383_v16 = vpop.f32.mrf.mxu0  ;;  %v403_v17 = vpop.f32.mrf.mxu1 }
  0xb5   : > { %v384_v18 = vadd.f32 %v866_v19, %v383_v16  ;;  %v404_v20 = vadd.f32 %v866_v19, %v403_v17 }
  0xb6   : > { %vm472_vm0 = vcmp.ge.f32.partialorder %v421_v14, 0.0  ;;  %v504_v21 = vmul.f32 0.2, %v421_v14  ;;  %vm480_vm2 = vcmp.ge.f32.partialorder %v441_v15, 0.0  ;;  %v512_v22 = vmul.f32 0.2, %v441_v15 }
  0xb7   : > { %vm457_vm3 = vcmp.ge.f32.partialorder %v384_v18, 0.0  ;;  %v489_v23 = vmul.f32 0.2, %v384_v18  ;;  %vm465_vm4 = vcmp.ge.f32.partialorder %v404_v20, 0.0  ;;  %v497_v24 = vmul.f32 0.2, %v404_v20 }
  0xb8   : > { %v536_v25 = vsel %vm472_vm0, %v421_v14, %v504_v21  ;;  %v544_v26 = vsel %vm480_vm2, %v441_v15, %v512_v22 }
  0xb9   : > { %569 = vst.msk [vmem:[%s874_s30 + $0x98] sm:$0xff] %vm549_vm1, %v536_v25  ;;  %v521_v27 = vsel %vm457_vm3, %v384_v18, %v489_v23  ;;  %v529_v28 = vsel %vm465_vm4, %v404_v20, %v497_v24 }
  0xba   : > { %577 = vst.msk [vmem:[%s874_s30 + $0xd8] sm:$0xff] %vm549_vm1, %v544_v26 }
  0xbb   : > { %554 = vst.msk [vmem:[%s874_s30 + $0x20] sm:$0xff] %vm549_vm1, %v521_v27  ;;  %v423_v29 = vpop.f32.mrf.mxu2  ;;  %v443_v30 = vpop.f32.mrf.mxu3 }
  0xbc   : > { %562 = vst.msk [vmem:[%s874_s30 + $0x60] sm:$0xff] %vm549_vm1, %v529_v28  ;;  %v424_v31 = vadd.f32 %v866_v19, %v423_v29  ;;  %v444_v32 = vadd.f32 %v866_v19, %v443_v30  ;;  %v385_v33 = vpop.f32.mrf.mxu0  ;;  %v405_v34 = vpop.f32.mrf.mxu1 }
  0xbd   : > { %v386_v35 = vadd.f32 %v866_v19, %v385_v33  ;;  %v406_v36 = vadd.f32 %v866_v19, %v405_v34 }
  0xbe   : > { %vm473_vm5 = vcmp.ge.f32.partialorder %v424_v31, 0.0  ;;  %v505_v37 = vmul.f32 0.2, %v424_v31  ;;  %vm481_vm6 = vcmp.ge.f32.partialorder %v444_v32, 0.0  ;;  %v513_v38 = vmul.f32 0.2, %v444_v32 }
  0xbf   : > { %vm458_vm7 = vcmp.ge.f32.partialorder %v386_v35, 0.0  ;;  %v490_v39 = vmul.f32 0.2, %v386_v35  ;;  %vm466_vm8 = vcmp.ge.f32.partialorder %v406_v36, 0.0  ;;  %v498_v40 = vmul.f32 0.2, %v406_v36 }
  0xc0   : > { %v537_v41 = vsel %vm473_vm5, %v424_v31, %v505_v37  ;;  %v545_v42 = vsel %vm481_vm6, %v444_v32, %v513_v38 }
  0xc1   : > { %570 = vst.msk [vmem:[%s874_s30 + $0xa0] sm:$0xff] %vm549_vm1, %v537_v41  ;;  %v522_v43 = vsel %vm458_vm7, %v386_v35, %v490_v39  ;;  %v530_v44 = vsel %vm466_vm8, %v406_v36, %v498_v40 }
  0xc2   : > { %578 = vst.msk [vmem:[%s874_s30 + $0xe0] sm:$0xff] %vm549_vm1, %v545_v42 }
  0xc3   : > { %555 = vst.msk [vmem:[%s874_s30 + $0x28] sm:$0xff] %vm549_vm1, %v522_v43  ;;  %v425_v45 = vpop.f32.mrf.mxu2  ;;  %v445_v46 = vpop.f32.mrf.mxu3 }
  0xc4   : > { %563 = vst.msk [vmem:[%s874_s30 + $0x68] sm:$0xff] %vm549_vm1, %v530_v44  ;;  %v426_v47 = vadd.f32 %v866_v19, %v425_v45  ;;  %v446_v48 = vadd.f32 %v866_v19, %v445_v46  ;;  %v388_v49 = vpop.f32.mrf.mxu0  ;;  %v408_v50 = vpop.f32.mrf.mxu1 }
  0xc5   : > { %v389_v51 = vadd.f32 %v866_v19, %v388_v49  ;;  %v409_v52 = vadd.f32 %v866_v19, %v408_v50 }
  0xc6   : > { %vm474_vm9 = vcmp.ge.f32.partialorder %v426_v47, 0.0  ;;  %v506_v53 = vmul.f32 0.2, %v426_v47  ;;  %vm482_vm10 = vcmp.ge.f32.partialorder %v446_v48, 0.0  ;;  %v514_v54 = vmul.f32 0.2, %v446_v48 }
  0xc7   : > { %vm459_vm11 = vcmp.ge.f32.partialorder %v389_v51, 0.0  ;;  %v491_v55 = vmul.f32 0.2, %v389_v51  ;;  %vm467_vm12 = vcmp.ge.f32.partialorder %v409_v52, 0.0  ;;  %v499_v56 = vmul.f32 0.2, %v409_v52 }
  0xc8   : > { %v538_v57 = vsel %vm474_vm9, %v426_v47, %v506_v53  ;;  %v546_v58 = vsel %vm482_vm10, %v446_v48, %v514_v54 }
  0xc9   : > { %571 = vst.msk [vmem:[%s874_s30 + $0xa8] sm:$0xff] %vm549_vm1, %v538_v57  ;;  %v523_v59 = vsel %vm459_vm11, %v389_v51, %v491_v55  ;;  %v531_v60 = vsel %vm467_vm12, %v409_v52, %v499_v56 }
  0xca   : > { %579 = vst.msk [vmem:[%s874_s30 + $0xe8] sm:$0xff] %vm549_vm1, %v546_v58 }
  0xcb   : > { %556 = vst.msk [vmem:[%s874_s30 + $0x30] sm:$0xff] %vm549_vm1, %v523_v59  ;;  %v428_v61 = vpop.f32.mrf.mxu2  ;;  %v448_v62 = vpop.f32.mrf.mxu3 }
  0xcc   : > { %564 = vst.msk [vmem:[%s874_s30 + $0x70] sm:$0xff] %vm549_vm1, %v531_v60  ;;  %v429_v63 = vadd.f32 %v866_v19, %v428_v61  ;;  %v449_v0 = vadd.f32 %v866_v19, %v448_v62  ;;  %v390_v1 = vpop.f32.mrf.mxu0  ;;  %v410_v2 = vpop.f32.mrf.mxu1 }
  0xcd   : > { %v391_v3 = vadd.f32 %v866_v19, %v390_v1  ;;  %v411_v4 = vadd.f32 %v866_v19, %v410_v2 }
  0xce   : > { %vm475_vm13 = vcmp.ge.f32.partialorder %v429_v63, 0.0  ;;  %v507_v5 = vmul.f32 0.2, %v429_v63  ;;  %vm483_vm14 = vcmp.ge.f32.partialorder %v449_v0, 0.0  ;;  %v515_v6 = vmul.f32 0.2, %v449_v0 }
  0xcf   : > { %vm460_vm15 = vcmp.ge.f32.partialorder %v391_v3, 0.0  ;;  %v492_v7 = vmul.f32 0.2, %v391_v3  ;;  %vm468_vm0 = vcmp.ge.f32.partialorder %v411_v4, 0.0  ;;  %v500_v8 = vmul.f32 0.2, %v411_v4 }
  0xd0   : > { %v539_v9 = vsel %vm475_vm13, %v429_v63, %v507_v5  ;;  %v547_v10 = vsel %vm483_vm14, %v449_v0, %v515_v6 }
  0xd1   : > { %572 = vst.msk [vmem:[%s874_s30 + $0xb0] sm:$0xff] %vm549_vm1, %v539_v9  ;;  %v524_v11 = vsel %vm460_vm15, %v391_v3, %v492_v7  ;;  %v532_v12 = vsel %vm468_vm0, %v411_v4, %v500_v8 }
  0xd2   : > { %580 = vst.msk [vmem:[%s874_s30 + $0xf0] sm:$0xff] %vm549_vm1, %v547_v10 }
  0xd3   : > { %557 = vst.msk [vmem:[%s874_s30 + $0x38] sm:$0xff] %vm549_vm1, %v524_v11  ;;  %v430_v13 = vpop.f32.mrf.mxu2  ;;  %v450_v14 = vpop.f32.mrf.mxu3 }
  0xd4   : > { %565 = vst.msk [vmem:[%s874_s30 + $0x78] sm:$0xff] %vm549_vm1, %v532_v12  ;;  %v431_v15 = vadd.f32 %v866_v19, %v430_v13  ;;  %v451_v16 = vadd.f32 %v866_v19, %v450_v14 }
  0xd6   : > { %vm476_vm2 = vcmp.ge.f32.partialorder %v431_v15, 0.0  ;;  %v508_v17 = vmul.f32 0.2, %v431_v15  ;;  %vm484_vm3 = vcmp.ge.f32.partialorder %v451_v16, 0.0  ;;  %v516_v18 = vmul.f32 0.2, %v451_v16 }
  0xd8   : > { %v540_v20 = vsel %vm476_vm2, %v431_v15, %v508_v17  ;;  %v548_v21 = vsel %vm484_vm3, %v451_v16, %v516_v18 }
  0xd9   : > { %573 = vst.msk [vmem:[%s874_s30 + $0xb8] sm:$0xff] %vm549_vm1, %v540_v20 }
  0xda   : > { %581 = vst.msk [vmem:[%s874_s30 + $0xf8] sm:$0xff] %vm549_vm1, %v548_v21 }
  0xdb PF: > { %s13_s12 = sadd.s32 1, %s784_s12  }
  0xdc   : > { %p10_p4 = scmp.ge.s32.totalorder %s13_s12, 4  }
  0xde   :  { %12 = sbr.rel (!%p10_p4) target bundleno = 1 (0x1), region = 62 }

// kernel: discriminator_forward.9
= control target key start
LH: loop header
LB: loop body
LE: loop exit
PB: predicated region body
PF: predicated region fallthrough
CT: control target
= control target key end

     0   :  { %vm188_vm0 = vcmask 130048   ;;  %s440_s1 = inlined_call_operand.vmem [shape: bf16[128,16], index: 1, kind: input, shape index: {}]   ;;  %s441_s0 = inlined_call_operand.vmem [shape: bf16[128,128], index: 0, kind: input, shape index: {}]   ;;  %s442_s2 = inlined_call_operand.vmem [shape: f32[128,16], index: 2, kind: output, shape index: {}]  }
   0x1   :  { %v288_v0 = vld [vmem:[%s440_s1 + $0x38] sm:$0xff]  ;;  %v287_v1 = vld [vmem:[%s440_s1 + $0x30] sm:$0xff]  ;;  %v286_v2 = vld [vmem:[%s440_s1 + $0x28] sm:$0xff] }
   0x2   :  { %139 = vmatpush.bf16.msra.mxu0 %v288_v0  ;;  %289 = vmatpush.bf16.msra.mxu1 %v288_v0  ;;  %v285_v3 = vld [vmem:[%s440_s1 + $0x20] sm:$0xff]  ;;  %v284_v4 = vld [vmem:[%s440_s1 + $0x18] sm:$0xff]  ;;  %v283_v5 = vld [vmem:[%s440_s1 + $0x10] sm:$0xff] }
   0x3   :  { %290 = vmatpush.bf16.msra.mxu2 %v288_v0  ;;  %291 = vmatpush.bf16.msra.mxu3 %v288_v0  ;;  %v282_v6 = vld [vmem:[%s440_s1 + $0x8] sm:$0xff]  ;;  %v281_v7 = vld [vmem:[%s440_s1] sm:$0xff]  ;;  %v275_v9 = vld [vmem:[%s441_s0 + $0x10] sm:$0xff] }
   0x4   :  { %v273_v8 = vld [vmem:[%s441_s0] sm:$0xff]  ;;  %v279_v11 = vld [vmem:[%s441_s0 + $0x30] sm:$0xff]  ;;  %v274_v12 = vld [vmem:[%s441_s0 + $0x8] sm:$0xff] }
   0x5   :  { %v277_v10 = vld [vmem:[%s441_s0 + $0x20] sm:$0xff]  ;;  %v276_v13 = vld [vmem:[%s441_s0 + $0x18] sm:$0xff]  ;;  %v278_v14 = vld [vmem:[%s441_s0 + $0x28] sm:$0xff] }
   0x6   :  { %140 = vmatpush.bf16.msra.mxu0 %v287_v1  ;;  %292 = vmatpush.bf16.msra.mxu1 %v287_v1  ;;  %v280_v15 = vld [vmem:[%s441_s0 + $0x38] sm:$0xff] }
   0x7   :  { %293 = vmatpush.bf16.msra.mxu2 %v287_v1  ;;  %294 = vmatpush.bf16.msra.mxu3 %v287_v1 }
   0xa   :  { %141 = vmatpush.bf16.msra.mxu0 %v286_v2  ;;  %295 = vmatpush.bf16.msra.mxu1 %v286_v2 }
   0xb   :  { %296 = vmatpush.bf16.msra.mxu2 %v286_v2  ;;  %297 = vmatpush.bf16.msra.mxu3 %v286_v2 }
   0xe   :  { %142 = vmatpush.bf16.msra.mxu0 %v285_v3  ;;  %298 = vmatpush.bf16.msra.mxu1 %v285_v3 }
   0xf   :  { %299 = vmatpush.bf16.msra.mxu2 %v285_v3  ;;  %300 = vmatpush.bf16.msra.mxu3 %v285_v3 }
  0x12   :  { %143 = vmatpush.bf16.msra.mxu0 %v284_v4  ;;  %301 = vmatpush.bf16.msra.mxu1 %v284_v4 }
  0x13   :  { %302 = vmatpush.bf16.msra.mxu2 %v284_v4  ;;  %303 = vmatpush.bf16.msra.mxu3 %v284_v4 }
  0x16   :  { %144 = vmatpush.bf16.msra.mxu0 %v283_v5  ;;  %304 = vmatpush.bf16.msra.mxu1 %v283_v5 }
  0x17   :  { %305 = vmatpush.bf16.msra.mxu2 %v283_v5  ;;  %306 = vmatpush.bf16.msra.mxu3 %v283_v5 }
  0x1a   :  { %145 = vmatpush.bf16.msra.mxu0 %v282_v6  ;;  %307 = vmatpush.bf16.msra.mxu1 %v282_v6 }
  0x1b   :  { %308 = vmatpush.bf16.msra.mxu2 %v282_v6  ;;  %309 = vmatpush.bf16.msra.mxu3 %v282_v6 }
  0x1e   :  { %146 = vmatpush.bf16.msra.mxu0 %v281_v7  ;;  %310 = vmatpush.bf16.msra.mxu1 %v281_v7 }
  0x1f   :  { %311 = vmatpush.bf16.msra.mxu2 %v281_v7  ;;  %312 = vmatpush.bf16.msra.mxu3 %v281_v7 }
  0x21   :  { %147 = vmatmul.bf16.vlgmr.msra.gmra.mxu0 %v273_v8  ;;  %157 = vmatmul.bf16.vlgmr.msra.gmra.mxu1 %v275_v9 }
  0x22   :  { %167 = vmatmul.bf16.vlgmr.msra.gmra.mxu2 %v277_v10  ;;  %177 = vmatmul.bf16.vlgmr.msra.gmra.mxu3 %v279_v11 }
  0x31   :  { %152 = vmatmul.bf16.gmra.mxu0 %v274_v12  ;;  %162 = vmatmul.bf16.gmra.mxu1 %v276_v13 }
  0x32   :  { %172 = vmatmul.bf16.gmra.mxu2 %v278_v14  ;;  %182 = vmatmul.bf16.gmra.mxu3 %v280_v15 }
  0x9e   :  { %v148_v16 = vpop.f32.mrf.mxu0  ;;  %v158_v17 = vpop.f32.mrf.mxu1 }
  0x9f   :  { %189 = vst.msk [vmem:[%s442_s2] sm:$0xff] %vm188_vm0, %v148_v16 }
  0xa0   :  { %193 = vst.msk [vmem:[%s442_s2 + $0x20] sm:$0xff] %vm188_vm0, %v158_v17 }
  0xa5   :  { %v168_v18 = vpop.f32.mrf.mxu2  ;;  %v178_v19 = vpop.f32.mrf.mxu3 }
  0xa6   :  { %197 = vst.msk [vmem:[%s442_s2 + $0x40] sm:$0xff] %vm188_vm0, %v168_v18  ;;  %v150_v20 = vpop.f32.mrf.mxu0  ;;  %v160_v21 = vpop.f32.mrf.mxu1 }
  0xa7   :  { %201 = vst.msk [vmem:[%s442_s2 + $0x60] sm:$0xff] %vm188_vm0, %v178_v19 }
  0xa8   :  { %190 = vst.msk [vmem:[%s442_s2 + $0x8] sm:$0xff] %vm188_vm0, %v150_v20 }
  0xa9   :  { %194 = vst.msk [vmem:[%s442_s2 + $0x28] sm:$0xff] %vm188_vm0, %v160_v21 }
  0xad   :  { %v170_v22 = vpop.f32.mrf.mxu2  ;;  %v180_v23 = vpop.f32.mrf.mxu3 }
  0xae   :  { %198 = vst.msk [vmem:[%s442_s2 + $0x48] sm:$0xff] %vm188_vm0, %v170_v22  ;;  %v153_v24 = vpop.f32.mrf.mxu0  ;;  %v163_v25 = vpop.f32.mrf.mxu1 }
  0xaf   :  { %202 = vst.msk [vmem:[%s442_s2 + $0x68] sm:$0xff] %vm188_vm0, %v180_v23 }
  0xb0   :  { %191 = vst.msk [vmem:[%s442_s2 + $0x10] sm:$0xff] %vm188_vm0, %v153_v24 }
  0xb1   :  { %195 = vst.msk [vmem:[%s442_s2 + $0x30] sm:$0xff] %vm188_vm0, %v163_v25 }
  0xb5   :  { %v173_v26 = vpop.f32.mrf.mxu2  ;;  %v183_v27 = vpop.f32.mrf.mxu3 }
  0xb6   :  { %199 = vst.msk [vmem:[%s442_s2 + $0x50] sm:$0xff] %vm188_vm0, %v173_v26  ;;  %v155_v28 = vpop.f32.mrf.mxu0  ;;  %v165_v29 = vpop.f32.mrf.mxu1 }
  0xb7   :  { %203 = vst.msk [vmem:[%s442_s2 + $0x70] sm:$0xff] %vm188_vm0, %v183_v27 }
  0xb8   :  { %192 = vst.msk [vmem:[%s442_s2 + $0x18] sm:$0xff] %vm188_vm0, %v155_v28 }
  0xb9   :  { %196 = vst.msk [vmem:[%s442_s2 + $0x38] sm:$0xff] %vm188_vm0, %v165_v29 }
  0xbd   :  { %v175_v30 = vpop.f32.mrf.mxu2  ;;  %v185_v31 = vpop.f32.mrf.mxu3 }
  0xbe   :  { %200 = vst.msk [vmem:[%s442_s2 + $0x58] sm:$0xff] %vm188_vm0, %v175_v30 }
  0xbf   :  { %204 = vst.msk [vmem:[%s442_s2 + $0x78] sm:$0xff] %vm188_vm0, %v185_v31 }

// kernel: discriminator_forward.10
= control target key start
LH: loop header
LB: loop body
LE: loop exit
PB: predicated region body
PF: predicated region fallthrough
CT: control target
= control target key end

     0   :  { %s435_s6 = smov 0   ;;  %s437_s7 = smov 0   ;;  %s509_s0 = inlined_call_operand.vmem [shape: f32[2,64,16], index: 0, kind: input, shape index: {}]   ;;  %s510_s1 = inlined_call_operand.vmem [shape: f32[2,64,16], index: 1, kind: output, shape index: {}]  }
   0x1   :  { %s439_s8 = smov 0  }
   0x2 LB: > { %s23_s9 = sadd.s32 1, %s418_s7  ;;  %p362_p0 = scmp.ge.s32.totalorder %s422_s8, 1  ;;  %s422_s8 = sphi %s439_s8, %s11_s8   ;;  %s418_s7 = sphi %s437_s7, %s512_s7   ;;  %s414_s6 = sphi %s435_s6, %s511_s6  }
   0x3   : > { %p25_p1 = scmp.ge.s32.totalorder %s23_s9, 2  ;;  %p106_p2 = scmp.lt.s32.totalorder %s422_s8, 3 }
   0x5   : > { %s514_s9 = smov (%p25_p1, %s23_s9), 0  ;;  %p107_p3 = pnand %p362_p0, %p106_p2 }
   0x6   : > { %p132_p4 = scmp.lt.s32.totalorder (!%p107_p3), %s414_s6, 1 }
   0x7   : > { %110 = sbr.rel (%p107_p3) target bundleno = 111 (0x6f), region = 24 }
   0xc   : > { %s516_s6 = smov (!%p132_p4, %s414_s6), 1  ;;  %vm156_vm0 = vcmask 130048   ;;  %v424_v3 = vmov 64.0  }
   0xd   : > { %s369_s10 = sshll.u32 %s516_s6, 6  ;;  %396 = vrcp.f32 %v424_v3 }
   0xe   : > { %s139_s13 = scalar_lea.vmem %s509_s0, %s369_s10  ;;  %s482_s16 = scalar_lea.vmem %s510_s1, %s369_s10 }
   0xf   : > { %v148_v0 = vld [vmem:[%s139_s13] sm:$0xff]  ;;  %v149_v1 = vld [vmem:[%s139_s13 + $0x8] sm:$0xff]  ;;  %v150_v2 = vld [vmem:[%s139_s13 + $0x10] sm:$0xff] }
  0x10   : > { %v151_v4 = vld [vmem:[%s139_s13 + $0x18] sm:$0xff]  ;;  %v157_v5 = vsel %vm156_vm0, %v148_v0, 0.0  ;;  %v158_v6 = vsel %vm156_vm0, %v149_v1, 0.0  ;;  %v160_v7 = vsel %vm156_vm0, %v150_v2, 0.0  ;;  %v152_v8 = vld [vmem:[%s139_s13 + $0x20] sm:$0xff]  ;;  %v153_v11 = vld [vmem:[%s139_s13 + $0x28] sm:$0xff] }
  0x11   : > { %v159_v9 = vadd.f32 %v158_v6, %v157_v5  ;;  %v162_v10 = vsel %vm156_vm0, %v151_v4, 0.0  ;;  %v164_v13 = vsel %vm156_vm0, %v152_v8, 0.0  ;;  %v154_v15 = vld [vmem:[%s139_s13 + $0x30] sm:$0xff]  ;;  %v166_v17 = vsel %vm156_vm0, %v153_v11, 0.0  ;;  %v155_v18 = vld [vmem:[%s139_s13 + $0x38] sm:$0xff] }
  0x12   : > { %v168_v20 = vsel %vm156_vm0, %v154_v15, 0.0  ;;  %v170_v23 = vsel %vm156_vm0, %v155_v18, 0.0 }
  0x13   : > { %v161_v12 = vadd.f32 %v160_v7, %v159_v9  ;;  %v397_v14 = vpop.eup %396 }
  0x14   : > { %v179_v21 = vmul.f32 64.0, %v397_v14  ;;  %vm183_vm1 = vweird.f32 %v397_v14 }
  0x15   : > { %v163_v16 = vadd.f32 %v162_v10, %v161_v12 }
  0x16   : > { %v180_v25 = vsub.f32 1.0, %v179_v21 }
  0x17   : > { %v165_v19 = vadd.f32 %v164_v13, %v163_v16 }
  0x18   : > { %v181_v28 = vmul.f32 %v397_v14, %v180_v25 }
  0x19   : > { %v167_v22 = vadd.f32 %v166_v17, %v165_v19 }
  0x1a   : > { %v182_v31 = vadd.f32 %v397_v14, %v181_v28 }
  0x1b   : > { %v169_v24 = vadd.f32 %v168_v20, %v167_v22 }
  0x1c   : > { %v184_v34 = vsel %vm183_vm1, %v397_v14, %v182_v31 }
  0x1d   : > { %v171_v26 = vadd.f32 %v170_v23, %v169_v24 }
  0x1f   : > { %v172_v27 = vrot.slane %v171_v26, 4 }
  0x21   : > { %v173_v29 = vadd.f32 %v172_v27, %v171_v26 }
  0x23   : > { %v174_v30 = vrot.slane %v173_v29, 2 }
  0x25   : > { %v175_v32 = vadd.f32 %v174_v30, %v173_v29 }
  0x27   : > { %v176_v33 = vrot.slane %v175_v32, 1 }
  0x29   : > { %v177_v35 = vadd.f32 %v176_v33, %v175_v32 }
  0x2b   : > { %v185_v36 = vmul.f32 %v184_v34, %v177_v35 }
  0x2d   : > { %v186_v37 = vsub.f32 %v148_v0, %v185_v36  ;;  %v187_v38 = vsub.f32 %v149_v1, %v185_v36  ;;  %v188_v39 = vsub.f32 %v150_v2, %v185_v36  ;;  %v189_v40 = vsub.f32 %v151_v4, %v185_v36 }
  0x2e   : > { %v190_v41 = vsub.f32 %v152_v8, %v185_v36  ;;  %v191_v42 = vsub.f32 %v153_v11, %v185_v36  ;;  %v192_v47 = vsub.f32 %v154_v15, %v185_v36  ;;  %v193_v53 = vsub.f32 %v155_v18, %v185_v36 }
  0x2f   : > { %v194_v43 = vmul.f32 %v186_v37, %v186_v37  ;;  %v195_v44 = vmul.f32 %v187_v38, %v187_v38  ;;  %v196_v45 = vmul.f32 %v188_v39, %v188_v39  ;;  %v197_v46 = vmul.f32 %v189_v40, %v189_v40 }
  0x30   : > { %v198_v48 = vmul.f32 %v190_v41, %v190_v41  ;;  %v199_v54 = vmul.f32 %v191_v42, %v191_v42  ;;  %v200_v57 = vmul.f32 %v192_v47, %v192_v47  ;;  %v201_v60 = vmul.f32 %v193_v53, %v193_v53 }
  0x31   : > { %v202_v49 = vsel %vm156_vm0, %v194_v43, 0.0  ;;  %v203_v50 = vsel %vm156_vm0, %v195_v44, 0.0  ;;  %v205_v51 = vsel %vm156_vm0, %v196_v45, 0.0  ;;  %v207_v55 = vsel %vm156_vm0, %v197_v46, 0.0 }
  0x32   : > { %v204_v52 = vadd.f32 %v203_v50, %v202_v49  ;;  %v209_v58 = vsel %vm156_vm0, %v198_v48, 0.0  ;;  %v211_v61 = vsel %vm156_vm0, %v199_v54, 0.0  ;;  %v213_v63 = vsel %vm156_vm0, %v200_v57, 0.0 }
  0x33   : > { %v215_v1 = vsel %vm156_vm0, %v201_v60, 0.0 }
  0x34   : > { %v206_v56 = vadd.f32 %v205_v51, %v204_v52 }
  0x36   : > { %v208_v59 = vadd.f32 %v207_v55, %v206_v56 }
  0x38   : > { %v210_v62 = vadd.f32 %v209_v58, %v208_v59 }
  0x3a   : > { %v212_v0 = vadd.f32 %v211_v61, %v210_v62 }
  0x3c   : > { %v214_v2 = vadd.f32 %v213_v63, %v212_v0 }
  0x3e   : > { %v216_v3 = vadd.f32 %v215_v1, %v214_v2 }
  0x40   : > { %v217_v4 = vrot.slane %v216_v3, 4 }
  0x42   : > { %v218_v5 = vadd.f32 %v217_v4, %v216_v3 }
  0x44   : > { %v219_v6 = vrot.slane %v218_v5, 2 }
  0x46   : > { %v220_v7 = vadd.f32 %v219_v6, %v218_v5 }
  0x48   : > { %v221_v8 = vrot.slane %v220_v7, 1 }
  0x4a   : > { %v222_v9 = vadd.f32 %v221_v8, %v220_v7 }
  0x4c   : > { %v223_v10 = vmul.f32 %v222_v9, %v184_v34 }
  0x4e   : > { %v224_v11 = vadd.f32 1e-05, %v223_v10 }
  0x50   : > { %398 = vrsqrt.f32 %v224_v11  ;;  %vm231_vm2 = vweird.f32 %v224_v11 }
  0x56   : > { %v399_v12 = vpop.eup %398 }
  0x57   : > { %v226_v13 = vmul.f32 %v399_v12, %v224_v11  ;;  %vm232_vm3 = vweird.f32 %v399_v12 }
  0x58   : > { %vm233_vm4 = vmor %vm231_vm2, %vm232_vm3 }
  0x59   : > { %v227_v14 = vmul.f32 %v399_v12, %v226_v13 }
  0x5b   : > { %v228_v15 = vmul.f32 0.5, %v227_v14 }
  0x5d   : > { %v229_v16 = vsub.f32 1.5, %v228_v15 }
  0x5f   : > { %v230_v17 = vmul.f32 %v399_v12, %v229_v16 }
  0x61   : > { %v234_v18 = vsel %vm233_vm4, %v399_v12, %v230_v17 }
  0x62   : > { %v235_v19 = vmul.f32 %v234_v18, %v186_v37  ;;  %v236_v20 = vmul.f32 %v234_v18, %v187_v38  ;;  %v237_v21 = vmul.f32 %v234_v18, %v188_v39  ;;  %v238_v22 = vmul.f32 %v234_v18, %v189_v40 }
  0x63   : > { %v239_v23 = vmul.f32 %v234_v18, %v190_v41  ;;  %v240_v24 = vmul.f32 %v234_v18, %v191_v42  ;;  %v241_v25 = vmul.f32 %v234_v18, %v192_v47  ;;  %v242_v26 = vmul.f32 %v234_v18, %v193_v53 }
  0x64   : > { %vm243_vm5 = vcmp.ge.f32.partialorder %v235_v19, 0.0  ;;  %v251_v27 = vmul.f32 0.2, %v235_v19  ;;  %vm244_vm6 = vcmp.ge.f32.partialorder %v236_v20, 0.0  ;;  %v252_v28 = vmul.f32 0.2, %v236_v20 }
  0x65   : > { %vm245_vm7 = vcmp.ge.f32.partialorder %v237_v21, 0.0  ;;  %v253_v29 = vmul.f32 0.2, %v237_v21  ;;  %vm246_vm8 = vcmp.ge.f32.partialorder %v238_v22, 0.0  ;;  %v254_v30 = vmul.f32 0.2, %v238_v22 }
  0x66   : > { %v259_v31 = vsel %vm243_vm5, %v235_v19, %v251_v27  ;;  %v260_v32 = vsel %vm244_vm6, %v236_v20, %v252_v28  ;;  %vm247_vm9 = vcmp.ge.f32.partialorder %v239_v23, 0.0  ;;  %v255_v33 = vmul.f32 0.2, %v239_v23 }
  0x67   : > { %267 = vst.msk [vmem:[%s482_s16] sm:$0xff] %vm156_vm0, %v259_v31  ;;  %v261_v34 = vsel %vm245_vm7, %v237_v21, %v253_v29  ;;  %v262_v35 = vsel %vm246_vm8, %v238_v22, %v254_v30  ;;  %vm248_vm10 = vcmp.ge.f32.partialorder %v240_v24, 0.0  ;;  %v256_v36 = vmul.f32 0.2, %v240_v24 }
  0x68   : > { %268 = vst.msk [vmem:[%s482_s16 + $0x8] sm:$0xff] %vm156_vm0, %v260_v32  ;;  %v263_v37 = vsel %vm247_vm9, %v239_v23, %v255_v33  ;;  %vm249_vm11 = vcmp.ge.f32.partialorder %v241_v25, 0.0  ;;  %v257_v38 = vmul.f32 0.2, %v241_v25  ;;  %vm250_vm12 = vcmp.ge.f32.partialorder %v242_v26, 0.0 }
  0x69   : > { %269 = vst.msk [vmem:[%s482_s16 + $0x10] sm:$0xff] %vm156_vm0, %v261_v34  ;;  %v264_v39 = vsel %vm248_vm10, %v240_v24, %v256_v36  ;;  %v258_v40 = vmul.f32 0.2, %v242_v26 }
  0x6a   : > { %270 = vst.msk [vmem:[%s482_s16 + $0x18] sm:$0xff] %vm156_vm0, %v262_v35  ;;  %v265_v41 = vsel %vm249_vm11, %v241_v25, %v257_v38 }
  0x6b   : > { %271 = vst.msk [vmem:[%s482_s16 + $0x20] sm:$0xff] %vm156_vm0, %v263_v37  ;;  %v266_v42 = vsel %vm250_vm12, %v242_v26, %v258_v40 }
  0x6c   : > { %272 = vst.msk [vmem:[%s482_s16 + $0x28] sm:$0xff] %vm156_vm0, %v264_v39 }
  0x6d   : > { %273 = vst.msk [vmem:[%s482_s16 + $0x30] sm:$0xff] %vm156_vm0, %v265_v41 }
  0x6e   : > { %274 = vst.msk [vmem:[%s482_s16 + $0x38] sm:$0xff] %vm156_vm0, %v266_v42 }
  0x6f PF: > { %s11_s8 = sadd.s32 1, %s422_s8   ;;  %s511_s6 = smov %s418_s7 }
  0x70   : > { %p8_p5 = scmp.ge.s32.totalorder %s11_s8, 4   ;;  %s512_s7 = smov %s514_s9 }
  0x72   :  { %10 = sbr.rel (!%p8_p5) target bundleno = 2 (0x2), region = 54 }

// kernel: discriminator_forward.11
= control target key start
LH: loop header
LB: loop body
LE: loop exit
PB: predicated region body
PF: predicated region fallthrough
CT: control target
= control target key end

     0   :  { %vm201_vm0 = vcmask 261120   ;;  %s425_s1 = inlined_call_operand.vmem [shape: bf16[256,32], index: 1, kind: input, shape index: {}]   ;;  %s426_s0 = inlined_call_operand.vmem [shape: bf16[32,256], index: 0, kind: input, shape index: {}]   ;;  %s427_s2 = inlined_call_operand.vmem [shape: f32[32,32], index: 2, kind: output, shape index: {}]  }
   0x1   :  { %v301_v0 = vld [vmem:[%s425_s1 + $0x38] sm:$0xff]  ;;  %v300_v2 = vld [vmem:[%s425_s1 + $0x30] sm:$0xff]  ;;  %v299_v4 = vld [vmem:[%s425_s1 + $0x28] sm:$0xff] }
   0x2   :  { %v309_v1 = vld [vmem:[%s425_s1 + $0x78] sm:$0xff]  ;;  %163 = vmatpush.bf16.msra.mxu0 %v301_v0  ;;  %310 = vmatpush.bf16.msra.mxu2 %v301_v0  ;;  %v308_v3 = vld [vmem:[%s425_s1 + $0x70] sm:$0xff]  ;;  %v307_v5 = vld [vmem:[%s425_s1 + $0x68] sm:$0xff] }
   0x3   :  { %182 = vmatpush.bf16.msra.mxu1 %v309_v1  ;;  %318 = vmatpush.bf16.msra.mxu3 %v309_v1  ;;  %v298_v6 = vld [vmem:[%s425_s1 + $0x20] sm:$0xff]  ;;  %v297_v8 = vld [vmem:[%s425_s1 + $0x18] sm:$0xff]  ;;  %v296_v10 = vld [vmem:[%s425_s1 + $0x10] sm:$0xff] }
   0x4   :  { %v306_v7 = vld [vmem:[%s425_s1 + $0x60] sm:$0xff]  ;;  %v305_v9 = vld [vmem:[%s425_s1 + $0x58] sm:$0xff]  ;;  %v304_v11 = vld [vmem:[%s425_s1 + $0x50] sm:$0xff] }
   0x5   :  { %v295_v12 = vld [vmem:[%s425_s1 + $0x8] sm:$0xff]  ;;  %v294_v14 = vld [vmem:[%s425_s1] sm:$0xff]  ;;  %v220_v18 = vld [vmem:[%s426_s0 + $0x10] sm:$0xf] }
   0x6   :  { %164 = vmatpush.bf16.msra.mxu0 %v300_v2  ;;  %311 = vmatpush.bf16.msra.mxu2 %v300_v2  ;;  %v303_v13 = vld [vmem:[%s425_s1 + $0x48] sm:$0xff]  ;;  %v302_v15 = vld [vmem:[%s425_s1 + $0x40] sm:$0xff]  ;;  %v293_v19 = vld [vmem:[%s426_s0 + $0x14] sm:$0xf0] }
   0x7   :  { %183 = vmatpush.bf16.msra.mxu1 %v308_v3  ;;  %319 = vmatpush.bf16.msra.mxu3 %v308_v3  ;;  %v212_v16 = vld [vmem:[%s426_s0] sm:$0xf]  ;;  %v291_v17 = vld [vmem:[%s426_s0 + $0x4] sm:$0xf0]  ;;  %v290_v20 = vld [vmem:[%s426_s0 + $0x4] sm:$0xf]  ;;  %v221_v25 = vor.u32 %v293_v19, %v220_v18 }
   0x8   :  { %v214_v21 = vld [vmem:[%s426_s0 + $0x8] sm:$0xf0]  ;;  %v292_v22 = vld [vmem:[%s426_s0 + $0x14] sm:$0xf]  ;;  %v222_v23 = vld [vmem:[%s426_s0 + $0x18] sm:$0xf0]  ;;  %v213_v24 = vor.u32 %v291_v17, %v212_v16 }
   0x9   :  { %v217_v26 = vor.u32 %v290_v20, %v214_v21  ;;  %v225_v27 = vor.u32 %v292_v22, %v222_v23 }
   0xa   :  { %165 = vmatpush.bf16.msra.mxu0 %v299_v4  ;;  %312 = vmatpush.bf16.msra.mxu2 %v299_v4 }
   0xb   :  { %184 = vmatpush.bf16.msra.mxu1 %v307_v5  ;;  %320 = vmatpush.bf16.msra.mxu3 %v307_v5 }
   0xe   :  { %166 = vmatpush.bf16.msra.mxu0 %v298_v6  ;;  %313 = vmatpush.bf16.msra.mxu2 %v298_v6 }
   0xf   :  { %185 = vmatpush.bf16.msra.mxu1 %v306_v7  ;;  %321 = vmatpush.bf16.msra.mxu3 %v306_v7 }
  0x12   :  { %167 = vmatpush.bf16.msra.mxu0 %v297_v8  ;;  %314 = vmatpush.bf16.msra.mxu2 %v297_v8 }
  0x13   :  { %186 = vmatpush.bf16.msra.mxu1 %v305_v9  ;;  %322 = vmatpush.bf16.msra.mxu3 %v305_v9 }
  0x16   :  { %168 = vmatpush.bf16.msra.mxu0 %v296_v10  ;;  %315 = vmatpush.bf16.msra.mxu2 %v296_v10 }
  0x17   :  { %187 = vmatpush.bf16.msra.mxu1 %v304_v11  ;;  %323 = vmatpush.bf16.msra.mxu3 %v304_v11 }
  0x1a   :  { %169 = vmatpush.bf16.msra.mxu0 %v295_v12  ;;  %316 = vmatpush.bf16.msra.mxu2 %v295_v12 }
  0x1b   :  { %188 = vmatpush.bf16.msra.mxu1 %v303_v13  ;;  %324 = vmatpush.bf16.msra.mxu3 %v303_v13 }
  0x1e   :  { %170 = vmatpush.bf16.msra.mxu0 %v294_v14  ;;  %317 = vmatpush.bf16.msra.mxu2 %v294_v14 }
  0x1f   :  { %189 = vmatpush.bf16.msra.mxu1 %v302_v15  ;;  %325 = vmatpush.bf16.msra.mxu3 %v302_v15 }
  0x21   :  { %171 = vmatmul.bf16.vlgmr.msra.gmra.mxu0 %v213_v24  ;;  %176 = vmatmul.bf16.vlgmr.msra.gmra.mxu2 %v221_v25 }
  0x22   :  { %190 = vmatmul.bf16.vlgmr.msra.gmra.mxu1 %v217_v26  ;;  %195 = vmatmul.bf16.vlgmr.msra.gmra.mxu3 %v225_v27 }
  0x9e   :  { %v172_v28 = vpop.f32.mrf.mxu0 }
  0x9f   :  { %v191_v29 = vpop.f32.mrf.mxu1 }
  0xa0   :  { %v192_v30 = vadd.f32 %v191_v29, %v172_v28 }
  0xa2   :  { %202 = vst.msk [vmem:[%s427_s2] sm:$0xff] %vm201_vm0, %v192_v30 }
  0xa4   :  { %v177_v31 = vpop.f32.mrf.mxu2 }
  0xa5   :  { %v196_v32 = vpop.f32.mrf.mxu3 }
  0xa6   :  { %v197_v33 = vadd.f32 %v196_v32, %v177_v31  ;;  %v174_v34 = vpop.f32.mrf.mxu0 }
  0xa7   :  { %v193_v35 = vpop.f32.mrf.mxu1 }
  0xa8   :  { %204 = vst.msk [vmem:[%s427_s2 + $0x10] sm:$0xff] %vm201_vm0, %v197_v33  ;;  %v194_v36 = vadd.f32 %v193_v35, %v174_v34 }
  0xaa   :  { %203 = vst.msk [vmem:[%s427_s2 + $0x8] sm:$0xff] %vm201_vm0, %v194_v36 }
  0xac   :  { %v179_v37 = vpop.f32.mrf.mxu2 }
  0xad   :  { %v198_v38 = vpop.f32.mrf.mxu3 }
  0xae   :  { %v199_v39 = vadd.f32 %v198_v38, %v179_v37 }
  0xb0   :  { %205 = vst.msk [vmem:[%s427_s2 + $0x18] sm:$0xff] %vm201_vm0, %v199_v39 }

// kernel: discriminator_forward.12
= control target key start
LH: loop header
LB: loop body
LE: loop exit
PB: predicated region body
PF: predicated region fallthrough
CT: control target
= control target key end

     0   :  { %s363_s6 = smov 0   ;;  %s365_s7 = smov 0   ;;  %s409_s0 = inlined_call_operand.vmem [shape: f32[2,16,32], index: 0, kind: input, shape index: {}]   ;;  %s410_s1 = inlined_call_operand.vmem [shape: f32[2,16,32], index: 1, kind: output, shape index: {}]  }
   0x1   :  { %s367_s8 = smov 0  }
   0x2 LB: > { %s23_s9 = sadd.s32 1, %s346_s7  ;;  %p290_p0 = scmp.ge.s32.totalorder %s350_s8, 1  ;;  %s350_s8 = sphi %s367_s8, %s11_s8   ;;  %s346_s7 = sphi %s365_s7, %s412_s7   ;;  %s342_s6 = sphi %s363_s6, %s411_s6  }
   0x3   : > { %p25_p1 = scmp.ge.s32.totalorder %s23_s9, 2  ;;  %p106_p2 = scmp.lt.s32.totalorder %s350_s8, 3 }
   0x5   : > { %s414_s9 = smov (%p25_p1, %s23_s9), 0  ;;  %p107_p3 = pnand %p290_p0, %p106_p2 }
   0x6   : > { %p132_p4 = scmp.lt.s32.totalorder (!%p107_p3), %s342_s6, 1 }
   0x7   : > { %110 = sbr.rel (%p107_p3) target bundleno = 81 (0x51), region = 24 }
   0xc   : > { %v352_v0 = vmov 16.0   ;;  %s416_s6 = smov (!%p132_p4, %s342_s6), 1  ;;  %vm150_vm0 = vcmask 261120  }
   0xd   : > { %324 = vrcp.f32 %v352_v0  ;;  %s297_s10 = sshll.u32 %s416_s6, 4 }
   0xe   : > { %s139_s13 = scalar_lea.vmem %s409_s0, %s297_s10  ;;  %s147_s16 = scalar_lea.vmem %s410_s1, %s297_s10 }
   0xf   : > { %v148_v1 = vld [vmem:[%s139_s13] sm:$0xff]  ;;  %v149_v2 = vld [vmem:[%s139_s13 + $0x8] sm:$0xff] }
  0x10   : > { %v151_v4 = vsel %vm150_vm0, %v148_v1, 0.0  ;;  %v152_v5 = vsel %vm150_vm0, %v149_v2, 0.0 }
  0x11   : > { %v153_v6 = vadd.f32 %v152_v5, %v151_v4 }
  0x13   : > { %v325_v3 = vpop.eup %324  ;;  %v154_v8 = vrot.slane %v153_v6, 4 }
  0x14   : > { %v161_v7 = vmul.f32 16.0, %v325_v3  ;;  %vm165_vm1 = vweird.f32 %v325_v3 }
  0x15   : > { %v155_v10 = vadd.f32 %v154_v8, %v153_v6 }
  0x16   : > { %v162_v9 = vsub.f32 1.0, %v161_v7 }
  0x17   : > { %v156_v12 = vrot.slane %v155_v10, 2 }
  0x18   : > { %v163_v11 = vmul.f32 %v325_v3, %v162_v9 }
  0x19   : > { %v157_v14 = vadd.f32 %v156_v12, %v155_v10 }
  0x1a   : > { %v164_v13 = vadd.f32 %v325_v3, %v163_v11 }
  0x1b   : > { %v158_v15 = vrot.slane %v157_v14, 1 }
  0x1c   : > { %v166_v16 = vsel %vm165_vm1, %v325_v3, %v164_v13 }
  0x1d   : > { %v159_v17 = vadd.f32 %v158_v15, %v157_v14 }
  0x1f   : > { %v167_v18 = vmul.f32 %v166_v16, %v159_v17 }
  0x21   : > { %v168_v19 = vsub.f32 %v148_v1, %v167_v18  ;;  %v169_v20 = vsub.f32 %v149_v2, %v167_v18 }
  0x23   : > { %v170_v21 = vmul.f32 %v168_v19, %v168_v19  ;;  %v171_v22 = vmul.f32 %v169_v20, %v169_v20 }
  0x25   : > { %v172_v23 = vsel %vm150_vm0, %v170_v21, 0.0  ;;  %v173_v24 = vsel %vm150_vm0, %v171_v22, 0.0 }
  0x26   : > { %v174_v25 = vadd.f32 %v173_v24, %v172_v23 }
  0x28   : > { %v175_v26 = vrot.slane %v174_v25, 4 }
  0x2a   : > { %v176_v27 = vadd.f32 %v175_v26, %v174_v25 }
  0x2c   : > { %v177_v28 = vrot.slane %v176_v27, 2 }
  0x2e   : > { %v178_v29 = vadd.f32 %v177_v28, %v176_v27 }
  0x30   : > { %v179_v30 = vrot.slane %v178_v29, 1 }
  0x32   : > { %v180_v31 = vadd.f32 %v179_v30, %v178_v29 }
  0x34   : > { %v181_v32 = vmul.f32 %v180_v31, %v166_v16 }
  0x36   : > { %v182_v33 = vadd.f32 1e-05, %v181_v32 }
  0x38   : > { %326 = vrsqrt.f32 %v182_v33  ;;  %vm189_vm2 = vweird.f32 %v182_v33 }
  0x3e   : > { %v327_v34 = vpop.eup %326 }
  0x3f   : > { %v184_v35 = vmul.f32 %v327_v34, %v182_v33  ;;  %vm190_vm3 = vweird.f32 %v327_v34 }
  0x40   : > { %vm191_vm4 = vmor %vm189_vm2, %vm190_vm3 }
  0x41   : > { %v185_v36 = vmul.f32 %v327_v34, %v184_v35 }
  0x43   : > { %v186_v37 = vmul.f32 0.5, %v185_v36 }
  0x45   : > { %v187_v38 = vsub.f32 1.5, %v186_v37 }
  0x47   : > { %v188_v39 = vmul.f32 %v327_v34, %v187_v38 }
  0x49   : > { %v192_v40 = vsel %vm191_vm4, %v327_v34, %v188_v39 }
  0x4a   : > { %v193_v41 = vmul.f32 %v192_v40, %v168_v19  ;;  %v194_v42 = vmul.f32 %v192_v40, %v169_v20 }
  0x4c   : > { %vm195_vm5 = vcmp.ge.f32.partialorder %v193_v41, 0.0  ;;  %v197_v43 = vmul.f32 0.2, %v193_v41  ;;  %vm196_vm6 = vcmp.ge.f32.partialorder %v194_v42, 0.0  ;;  %v198_v44 = vmul.f32 0.2, %v194_v42 }
  0x4e   : > { %v199_v45 = vsel %vm195_vm5, %v193_v41, %v197_v43  ;;  %v200_v46 = vsel %vm196_vm6, %v194_v42, %v198_v44 }
  0x4f   : > { %201 = vst.msk [vmem:[%s147_s16] sm:$0xff] %vm150_vm0, %v199_v45 }
  0x50   : > { %202 = vst.msk [vmem:[%s147_s16 + $0x8] sm:$0xff] %vm150_vm0, %v200_v46 }
  0x51 PF: > { %s11_s8 = sadd.s32 1, %s350_s8   ;;  %s411_s6 = smov %s346_s7 }
  0x52   : > { %p8_p5 = scmp.ge.s32.totalorder %s11_s8, 4   ;;  %s412_s7 = smov %s414_s9 }
  0x54   :  { %10 = sbr.rel (!%p8_p5) target bundleno = 2 (0x2), region = 54 }

// kernel: discriminator_forward.13
= control target key start
LH: loop header
LB: loop body
LE: loop exit
PB: predicated region body
PF: predicated region fallthrough
CT: control target
= control target key end

     0   :  { %vm391_vm0 = vcmask 523264   ;;  %s775_s1 = inlined_call_operand.vmem [shape: bf16[512,64], index: 1, kind: input, shape index: {}]   ;;  %s776_s0 = inlined_call_operand.vmem [shape: bf16[32,512], index: 0, kind: input, shape index: {}]   ;;  %s777_s2 = inlined_call_operand.vmem [shape: f32[32,64], index: 2, kind: output, shape index: {}]  }
   0x1   :  { %v575_v0 = vld [vmem:[%s775_s1 + $0x38] sm:$0xff]  ;;  %v574_v4 = vld [vmem:[%s775_s1 + $0x30] sm:$0xff]  ;;  %v573_v8 = vld [vmem:[%s775_s1 + $0x28] sm:$0xff] }
   0x2   :  { %v583_v1 = vld [vmem:[%s775_s1 + $0x78] sm:$0xff]  ;;  %315 = vmatpush.bf16.msra.mxu0 %v575_v0  ;;  %v582_v5 = vld [vmem:[%s775_s1 + $0x70] sm:$0xff]  ;;  %v581_v9 = vld [vmem:[%s775_s1 + $0x68] sm:$0xff] }
   0x3   :  { %v591_v2 = vld [vmem:[%s775_s1 + $0xb8] sm:$0xff]  ;;  %334 = vmatpush.bf16.msra.mxu1 %v583_v1  ;;  %v590_v6 = vld [vmem:[%s775_s1 + $0xb0] sm:$0xff]  ;;  %v589_v10 = vld [vmem:[%s775_s1 + $0xa8] sm:$0xff] }
   0x4   :  { %v599_v3 = vld [vmem:[%s775_s1 + $0xf8] sm:$0xff]  ;;  %353 = vmatpush.bf16.msra.mxu2 %v591_v2  ;;  %v598_v7 = vld [vmem:[%s775_s1 + $0xf0] sm:$0xff]  ;;  %v597_v11 = vld [vmem:[%s775_s1 + $0xe8] sm:$0xff] }
   0x5   :  { %372 = vmatpush.bf16.msra.mxu3 %v599_v3  ;;  %v572_v12 = vld [vmem:[%s775_s1 + $0x20] sm:$0xff]  ;;  %v571_v16 = vld [vmem:[%s775_s1 + $0x18] sm:$0xff]  ;;  %v570_v20 = vld [vmem:[%s775_s1 + $0x10] sm:$0xff] }
   0x6   :  { %316 = vmatpush.bf16.msra.mxu0 %v574_v4  ;;  %v580_v13 = vld [vmem:[%s775_s1 + $0x60] sm:$0xff]  ;;  %v579_v17 = vld [vmem:[%s775_s1 + $0x58] sm:$0xff]  ;;  %v578_v21 = vld [vmem:[%s775_s1 + $0x50] sm:$0xff] }
   0x7   :  { %335 = vmatpush.bf16.msra.mxu1 %v582_v5  ;;  %v588_v14 = vld [vmem:[%s775_s1 + $0xa0] sm:$0xff]  ;;  %v587_v18 = vld [vmem:[%s775_s1 + $0x98] sm:$0xff]  ;;  %v586_v22 = vld [vmem:[%s775_s1 + $0x90] sm:$0xff] }
   0x8   :  { %354 = vmatpush.bf16.msra.mxu2 %v590_v6  ;;  %v596_v15 = vld [vmem:[%s775_s1 + $0xe0] sm:$0xff]  ;;  %v595_v19 = vld [vmem:[%s775_s1 + $0xd8] sm:$0xff]  ;;  %v594_v23 = vld [vmem:[%s775_s1 + $0xd0] sm:$0xff] }
   0x9   :  { %373 = vmatpush.bf16.msra.mxu3 %v598_v7  ;;  %v569_v24 = vld [vmem:[%s775_s1 + $0x8] sm:$0xff]  ;;  %v568_v28 = vld [vmem:[%s775_s1] sm:$0xff]  ;;  %v562_v33 = vld [vmem:[%s776_s0 + $0xc] sm:$0xf0] }
   0xa   :  { %317 = vmatpush.bf16.msra.mxu0 %v573_v8  ;;  %v577_v25 = vld [vmem:[%s775_s1 + $0x48] sm:$0xff]  ;;  %v576_v29 = vld [vmem:[%s775_s1 + $0x40] sm:$0xff]  ;;  %v404_v35 = vld [vmem:[%s776_s0 + $0x10] sm:$0xf0] }
   0xb   :  { %336 = vmatpush.bf16.msra.mxu1 %v581_v9  ;;  %v585_v26 = vld [vmem:[%s775_s1 + $0x88] sm:$0xff]  ;;  %v584_v30 = vld [vmem:[%s775_s1 + $0x80] sm:$0xff]  ;;  %v563_v37 = vld [vmem:[%s776_s0 + $0x14] sm:$0xf0] }
   0xc   :  { %355 = vmatpush.bf16.msra.mxu2 %v589_v10  ;;  %v593_v27 = vld [vmem:[%s775_s1 + $0xc8] sm:$0xff]  ;;  %v592_v31 = vld [vmem:[%s775_s1 + $0xc0] sm:$0xff]  ;;  %v412_v39 = vld [vmem:[%s776_s0 + $0x18] sm:$0xf0] }
   0xd   :  { %374 = vmatpush.bf16.msra.mxu3 %v597_v11  ;;  %v402_v32 = vld [vmem:[%s776_s0] sm:$0xf]  ;;  %v560_v34 = vld [vmem:[%s776_s0 + $0x4] sm:$0xf]  ;;  %v410_v36 = vld [vmem:[%s776_s0 + $0x8] sm:$0xf] }
   0xe   :  { %318 = vmatpush.bf16.msra.mxu0 %v572_v12  ;;  %v561_v38 = vld [vmem:[%s776_s0 + $0xc] sm:$0xf]  ;;  %v403_v40 = vor.u32 %v562_v33, %v402_v32  ;;  %v407_v41 = vor.u32 %v560_v34, %v404_v35  ;;  %v411_v42 = vor.u32 %v563_v37, %v410_v36  ;;  %v418_v44 = vld [vmem:[%s776_s0 + $0x20] sm:$0xf]  ;;  %v566_v45 = vld [vmem:[%s776_s0 + $0x2c] sm:$0xf0] }
   0xf   :  { %337 = vmatpush.bf16.msra.mxu1 %v580_v13  ;;  %v415_v43 = vor.u32 %v561_v38, %v412_v39  ;;  %v564_v46 = vld [vmem:[%s776_s0 + $0x24] sm:$0xf]  ;;  %v420_v47 = vld [vmem:[%s776_s0 + $0x30] sm:$0xf0]  ;;  %v426_v48 = vld [vmem:[%s776_s0 + $0x28] sm:$0xf]  ;;  %v419_v52 = vor.u32 %v566_v45, %v418_v44 }
  0x10   :  { %356 = vmatpush.bf16.msra.mxu2 %v588_v14  ;;  %v567_v49 = vld [vmem:[%s776_s0 + $0x34] sm:$0xf0]  ;;  %v565_v50 = vld [vmem:[%s776_s0 + $0x2c] sm:$0xf]  ;;  %v428_v51 = vld [vmem:[%s776_s0 + $0x38] sm:$0xf0]  ;;  %v423_v53 = vor.u32 %v564_v46, %v420_v47 }
  0x11   :  { %375 = vmatpush.bf16.msra.mxu3 %v596_v15  ;;  %v427_v54 = vor.u32 %v567_v49, %v426_v48  ;;  %v431_v55 = vor.u32 %v565_v50, %v428_v51 }
  0x12   :  { %319 = vmatpush.bf16.msra.mxu0 %v571_v16 }
  0x13   :  { %338 = vmatpush.bf16.msra.mxu1 %v579_v17 }
  0x14   :  { %357 = vmatpush.bf16.msra.mxu2 %v587_v18 }
  0x15   :  { %376 = vmatpush.bf16.msra.mxu3 %v595_v19 }
  0x16   :  { %320 = vmatpush.bf16.msra.mxu0 %v570_v20 }
  0x17   :  { %339 = vmatpush.bf16.msra.mxu1 %v578_v21 }
  0x18   :  { %358 = vmatpush.bf16.msra.mxu2 %v586_v22 }
  0x19   :  { %377 = vmatpush.bf16.msra.mxu3 %v594_v23 }
  0x1a   :  { %321 = vmatpush.bf16.msra.mxu0 %v569_v24 }
  0x1b   :  { %340 = vmatpush.bf16.msra.mxu1 %v577_v25 }
  0x1c   :  { %359 = vmatpush.bf16.msra.mxu2 %v585_v26 }
  0x1d   :  { %378 = vmatpush.bf16.msra.mxu3 %v593_v27 }
  0x1e   :  { %322 = vmatpush.bf16.msra.mxu0 %v568_v28 }
  0x1f   :  { %341 = vmatpush.bf16.msra.mxu1 %v576_v29 }
  0x20   :  { %360 = vmatpush.bf16.msra.mxu2 %v584_v30 }
  0x21   :  { %379 = vmatpush.bf16.msra.mxu3 %v592_v31  ;;  %323 = vmatmul.bf16.vlgmr.msra.gmra.mxu0 %v403_v40 }
  0x22   :  { %342 = vmatmul.bf16.vlgmr.msra.gmra.mxu1 %v407_v41 }
  0x23   :  { %361 = vmatmul.bf16.vlgmr.msra.gmra.mxu2 %v411_v42 }
  0x24   :  { %380 = vmatmul.bf16.vlgmr.msra.gmra.mxu3 %v415_v43 }
  0x31   :  { %328 = vmatmul.bf16.gmra.mxu0 %v419_v52 }
  0x32   :  { %347 = vmatmul.bf16.gmra.mxu1 %v423_v53 }
  0x33   :  { %366 = vmatmul.bf16.gmra.mxu2 %v427_v54 }
  0x34   :  { %385 = vmatmul.bf16.gmra.mxu3 %v431_v55 }
  0x9e   :  { %v324_v56 = vpop.f32.mrf.mxu0 }
  0x9f   :  { %v343_v57 = vpop.f32.mrf.mxu1 }
  0xa0   :  { %v344_v58 = vadd.f32 %v343_v57, %v324_v56 }
  0xa6   :  { %v362_v59 = vpop.f32.mrf.mxu2  ;;  %v326_v62 = vpop.f32.mrf.mxu0 }
  0xa7   :  { %v381_v60 = vpop.f32.mrf.mxu3  ;;  %v363_v61 = vadd.f32 %v362_v59, %v344_v58  ;;  %v345_v63 = vpop.f32.mrf.mxu1 }
  0xa8   :  { %v346_v1 = vadd.f32 %v345_v63, %v326_v62 }
  0xa9   :  { %v382_v0 = vadd.f32 %v381_v60, %v363_v61 }
  0xab   :  { %392 = vst.msk [vmem:[%s777_s2] sm:$0xff] %vm391_vm0, %v382_v0 }
  0xae   :  { %v364_v2 = vpop.f32.mrf.mxu2  ;;  %v329_v5 = vpop.f32.mrf.mxu0 }
  0xaf   :  { %v383_v3 = vpop.f32.mrf.mxu3  ;;  %v365_v4 = vadd.f32 %v364_v2, %v346_v1  ;;  %v348_v6 = vpop.f32.mrf.mxu1 }
  0xb0   :  { %v349_v8 = vadd.f32 %v348_v6, %v329_v5 }
  0xb1   :  { %v384_v7 = vadd.f32 %v383_v3, %v365_v4 }
  0xb3   :  { %393 = vst.msk [vmem:[%s777_s2 + $0x8] sm:$0xff] %vm391_vm0, %v384_v7 }
  0xb6   :  { %v367_v9 = vpop.f32.mrf.mxu2  ;;  %v331_v13 = vpop.f32.mrf.mxu0 }
  0xb7   :  { %v386_v10 = vpop.f32.mrf.mxu3  ;;  %v368_v11 = vadd.f32 %v367_v9, %v349_v8  ;;  %v350_v14 = vpop.f32.mrf.mxu1 }
  0xb8   :  { %v351_v15 = vadd.f32 %v350_v14, %v331_v13 }
  0xb9   :  { %v387_v12 = vadd.f32 %v386_v10, %v368_v11 }
  0xbb   :  { %394 = vst.msk [vmem:[%s777_s2 + $0x10] sm:$0xff] %vm391_vm0, %v387_v12 }
  0xbe   :  { %v369_v16 = vpop.f32.mrf.mxu2 }
  0xbf   :  { %v370_v17 = vadd.f32 %v369_v16, %v351_v15  ;;  %v388_v18 = vpop.f32.mrf.mxu3 }
  0xc1   :  { %v389_v19 = vadd.f32 %v388_v18, %v370_v17 }
  0xc3   :  { %395 = vst.msk [vmem:[%s777_s2 + $0x18] sm:$0xff] %vm391_vm0, %v389_v19 }

// kernel: discriminator_forward.14
= control target key start
LH: loop header
LB: loop body
LE: loop exit
PB: predicated region body
PF: predicated region fallthrough
CT: control target
= control target key end

     0   :  { %s364_s6 = smov 0   ;;  %s366_s7 = smov 0   ;;  %s410_s0 = inlined_call_operand.vmem [shape: f32[2,9,64], index: 0, kind: input, shape index: {}]   ;;  %s411_s1 = inlined_call_operand.vmem [shape: f32[2,9,64], index: 1, kind: output, shape index: {}]  }
   0x1   :  { %s368_s8 = smov 0  }
   0x2 LB: > { %s23_s9 = sadd.s32 1, %s347_s7  ;;  %p291_p0 = scmp.ge.s32.totalorder %s351_s8, 1  ;;  %s351_s8 = sphi %s368_s8, %s11_s8   ;;  %s347_s7 = sphi %s366_s7, %s413_s7   ;;  %s343_s6 = sphi %s364_s6, %s412_s6  }
   0x3   : > { %p25_p1 = scmp.ge.s32.totalorder %s23_s9, 2  ;;  %p106_p2 = scmp.lt.s32.totalorder %s351_s8, 3 }
   0x5   : > { %s415_s9 = smov (%p25_p1, %s23_s9), 0  ;;  %p107_p3 = pnand %p291_p0, %p106_p2 }
   0x6   : > { %p132_p4 = scmp.lt.s32.totalorder (!%p107_p3), %s343_s6, 1 }
   0x7   : > { %110 = sbr.rel (%p107_p3) target bundleno = 81 (0x51), region = 24 }
   0xc   : > { %v353_v0 = vmov 9.0   ;;  %s417_s6 = smov (!%p132_p4, %s343_s6), 1  ;;  %vm150_vm0 = vcmask 523264   ;;  %vm152_vm1 = vcmask 516096  }
   0xd   : > { %325 = vrcp.f32 %v353_v0  ;;  %s298_s10 = sshll.u32 %s417_s6, 4 }
   0xe   : > { %s139_s13 = scalar_lea.vmem %s410_s0, %s298_s10  ;;  %s147_s16 = scalar_lea.vmem %s411_s1, %s298_s10 }
   0xf   : > { %v148_v1 = vld [vmem:[%s139_s13] sm:$0xff]  ;;  %v149_v2 = vld [vmem:[%s139_s13 + $0x8] sm:$0x1] }
  0x10   : > { %v151_v4 = vsel %vm150_vm0, %v148_v1, 0.0  ;;  %v153_v5 = vsel %vm152_vm1, %v149_v2, 0.0 }
  0x11   : > { %v154_v6 = vadd.f32 %v153_v5, %v151_v4 }
  0x13   : > { %v326_v3 = vpop.eup %325  ;;  %v155_v8 = vrot.slane %v154_v6, 4 }
  0x14   : > { %v162_v7 = vmul.f32 9.0, %v326_v3  ;;  %vm166_vm2 = vweird.f32 %v326_v3 }
  0x15   : > { %v156_v10 = vadd.f32 %v155_v8, %v154_v6 }
  0x16   : > { %v163_v9 = vsub.f32 1.0, %v162_v7 }
  0x17   : > { %v157_v12 = vrot.slane %v156_v10, 2 }
  0x18   : > { %v164_v11 = vmul.f32 %v326_v3, %v163_v9 }
  0x19   : > { %v158_v14 = vadd.f32 %v157_v12, %v156_v10 }
  0x1a   : > { %v165_v13 = vadd.f32 %v326_v3, %v164_v11 }
  0x1b   : > { %v159_v15 = vrot.slane %v158_v14, 1 }
  0x1c   : > { %v167_v16 = vsel %vm166_vm2, %v326_v3, %v165_v13 }
  0x1d   : > { %v160_v17 = vadd.f32 %v159_v15, %v158_v14 }
  0x1f   : > { %v168_v18 = vmul.f32 %v167_v16, %v160_v17 }
  0x21   : > { %v169_v19 = vsub.f32 %v148_v1, %v168_v18  ;;  %v170_v20 = vsub.f32 %v149_v2, %v168_v18 }
  0x23   : > { %v171_v21 = vmul.f32 %v169_v19, %v169_v19  ;;  %v172_v22 = vmul.f32 %v170_v20, %v170_v20 }
  0x25   : > { %v173_v23 = vsel %vm150_vm0, %v171_v21, 0.0  ;;  %v174_v24 = vsel %vm152_vm1, %v172_v22, 0.0 }
  0x26   : > { %v175_v25 = vadd.f32 %v174_v24, %v173_v23 }
  0x28   : > { %v176_v26 = vrot.slane %v175_v25, 4 }
  0x2a   : > { %v177_v27 = vadd.f32 %v176_v26, %v175_v25 }
  0x2c   : > { %v178_v28 = vrot.slane %v177_v27, 2 }
  0x2e   : > { %v179_v29 = vadd.f32 %v178_v28, %v177_v27 }
  0x30   : > { %v180_v30 = vrot.slane %v179_v29, 1 }
  0x32   : > { %v181_v31 = vadd.f32 %v180_v30, %v179_v29 }
  0x34   : > { %v182_v32 = vmul.f32 %v181_v31, %v167_v16 }
  0x36   : > { %v183_v33 = vadd.f32 1e-05, %v182_v32 }
  0x38   : > { %327 = vrsqrt.f32 %v183_v33  ;;  %vm190_vm3 = vweird.f32 %v183_v33 }
  0x3e   : > { %v328_v34 = vpop.eup %327 }
  0x3f   : > { %v185_v35 = vmul.f32 %v328_v34, %v183_v33  ;;  %vm191_vm4 = vweird.f32 %v328_v34 }
  0x40   : > { %vm192_vm5 = vmor %vm190_vm3, %vm191_vm4 }
  0x41   : > { %v186_v36 = vmul.f32 %v328_v34, %v185_v35 }
  0x43   : > { %v187_v37 = vmul.f32 0.5, %v186_v36 }
  0x45   : > { %v188_v38 = vsub.f32 1.5, %v187_v37 }
  0x47   : > { %v189_v39 = vmul.f32 %v328_v34, %v188_v38 }
  0x49   : > { %v193_v40 = vsel %vm192_vm5, %v328_v34, %v189_v39 }
  0x4a   : > { %v194_v41 = vmul.f32 %v193_v40, %v169_v19  ;;  %v195_v42 = vmul.f32 %v193_v40, %v170_v20 }
  0x4c   : > { %vm196_vm6 = vcmp.ge.f32.partialorder %v194_v41, 0.0  ;;  %v198_v43 = vmul.f32 0.2, %v194_v41  ;;  %vm197_vm7 = vcmp.ge.f32.partialorder %v195_v42, 0.0  ;;  %v199_v44 = vmul.f32 0.2, %v195_v42 }
  0x4e   : > { %v200_v45 = vsel %vm196_vm6, %v194_v41, %v198_v43  ;;  %v201_v46 = vsel %vm197_vm7, %v195_v42, %v199_v44 }
  0x4f   : > { %202 = vst.msk [vmem:[%s147_s16] sm:$0xff] %vm150_vm0, %v200_v45 }
  0x50   : > { %203 = vst.msk [vmem:[%s147_s16 + $0x8] sm:$0x1] %vm152_vm1, %v201_v46 }
  0x51 PF: > { %s11_s8 = sadd.s32 1, %s351_s8   ;;  %s412_s6 = smov %s347_s7 }
  0x52   : > { %p8_p5 = scmp.ge.s32.totalorder %s11_s8, 4   ;;  %s413_s7 = smov %s415_s9 }
  0x54   :  { %10 = sbr.rel (!%p8_p5) target bundleno = 2 (0x2), region = 54 }

// kernel: discriminator_forward.15
= control target key start
LH: loop header
LB: loop body
LE: loop exit
PB: predicated region body
PF: predicated region fallthrough
CT: control target
= control target key end

     0   :  { %vm692_vm0 = vcmask 7168   ;;  %s1329_s1 = inlined_call_operand.vmem [shape: bf16[1024,1], index: 1, kind: input, shape index: {}]   ;;  %s1330_s0 = inlined_call_operand.vmem [shape: bf16[16,1024], index: 0, kind: input, shape index: {}]   ;;  %s1331_s2 = inlined_call_operand.<no memory space> [shape: f32[1,1], index: 2, kind: input, shape index: {}]   ;;  %s1332_s3 = inlined_call_operand.vmem [shape: f32[16,1], index: 3, kind: output, shape index: {}]  }
   0x1   :  { %v1002_v0 = vld [vmem:[%s1329_s1 + $0x38] sm:$0xff]  ;;  %v1001_v4 = vld [vmem:[%s1329_s1 + $0x30] sm:$0xff]  ;;  %v1000_v8 = vld [vmem:[%s1329_s1 + $0x28] sm:$0xff]  ;;  %v8_v50 = vstv %s1331_s2 }
   0x2   :  { %v1010_v1 = vld [vmem:[%s1329_s1 + $0x78] sm:$0xff]  ;;  %580 = vmatpush.bf16.msra.mxu0 %v1002_v0  ;;  %v1009_v5 = vld [vmem:[%s1329_s1 + $0x70] sm:$0xff]  ;;  %v1008_v9 = vld [vmem:[%s1329_s1 + $0x68] sm:$0xff]  ;;  %9 = vst [vmem:[#allocation2] sm:$0x1] %v8_v50 }
   0x3   :  { %v1018_v2 = vld [vmem:[%s1329_s1 + $0xb8] sm:$0xff]  ;;  %594 = vmatpush.bf16.msra.mxu1 %v1010_v1  ;;  %v1017_v6 = vld [vmem:[%s1329_s1 + $0xb0] sm:$0xff]  ;;  %v1016_v10 = vld [vmem:[%s1329_s1 + $0xa8] sm:$0xff] }
   0x4   :  { %v1026_v3 = vld [vmem:[%s1329_s1 + $0xf8] sm:$0xff]  ;;  %608 = vmatpush.bf16.msra.mxu2 %v1018_v2  ;;  %v1025_v7 = vld [vmem:[%s1329_s1 + $0xf0] sm:$0xff]  ;;  %v1024_v11 = vld [vmem:[%s1329_s1 + $0xe8] sm:$0xff] }
   0x5   :  { %622 = vmatpush.bf16.msra.mxu3 %v1026_v3  ;;  %v999_v12 = vld [vmem:[%s1329_s1 + $0x20] sm:$0xff]  ;;  %v998_v16 = vld [vmem:[%s1329_s1 + $0x18] sm:$0xff]  ;;  %v997_v20 = vld [vmem:[%s1329_s1 + $0x10] sm:$0xff] }
   0x6   :  { %581 = vmatpush.bf16.msra.mxu0 %v1001_v4  ;;  %v1007_v13 = vld [vmem:[%s1329_s1 + $0x60] sm:$0xff]  ;;  %v1006_v17 = vld [vmem:[%s1329_s1 + $0x58] sm:$0xff]  ;;  %v1005_v21 = vld [vmem:[%s1329_s1 + $0x50] sm:$0xff] }
   0x7   :  { %595 = vmatpush.bf16.msra.mxu1 %v1009_v5  ;;  %v1015_v14 = vld [vmem:[%s1329_s1 + $0xa0] sm:$0xff]  ;;  %v1014_v18 = vld [vmem:[%s1329_s1 + $0x98] sm:$0xff]  ;;  %v1013_v22 = vld [vmem:[%s1329_s1 + $0x90] sm:$0xff] }
   0x8   :  { %609 = vmatpush.bf16.msra.mxu2 %v1017_v6  ;;  %v1023_v15 = vld [vmem:[%s1329_s1 + $0xe0] sm:$0xff]  ;;  %v1022_v19 = vld [vmem:[%s1329_s1 + $0xd8] sm:$0xff]  ;;  %v1021_v23 = vld [vmem:[%s1329_s1 + $0xd0] sm:$0xff] }
   0x9   :  { %623 = vmatpush.bf16.msra.mxu3 %v1025_v7  ;;  %v996_v24 = vld [vmem:[%s1329_s1 + $0x8] sm:$0xff]  ;;  %v995_v28 = vld [vmem:[%s1329_s1] sm:$0xff]  ;;  %v1034_v32 = vld [vmem:[%s1329_s1 + $0x138] sm:$0xff] }
   0xa   :  { %582 = vmatpush.bf16.msra.mxu0 %v1000_v8  ;;  %v1004_v25 = vld [vmem:[%s1329_s1 + $0x48] sm:$0xff]  ;;  %v1003_v29 = vld [vmem:[%s1329_s1 + $0x40] sm:$0xff]  ;;  %v1042_v33 = vld [vmem:[%s1329_s1 + $0x178] sm:$0xff] }
   0xb   :  { %596 = vmatpush.bf16.msra.mxu1 %v1008_v9  ;;  %v1012_v26 = vld [vmem:[%s1329_s1 + $0x88] sm:$0xff]  ;;  %v1011_v30 = vld [vmem:[%s1329_s1 + $0x80] sm:$0xff]  ;;  %v1050_v42 = vld [vmem:[%s1329_s1 + $0x1b8] sm:$0xff] }
   0xc   :  { %610 = vmatpush.bf16.msra.mxu2 %v1016_v10  ;;  %v1020_v27 = vld [vmem:[%s1329_s1 + $0xc8] sm:$0xff]  ;;  %v1019_v31 = vld [vmem:[%s1329_s1 + $0xc0] sm:$0xff]  ;;  %v1058_v43 = vld [vmem:[%s1329_s1 + $0x1f8] sm:$0xff] }
   0xd   :  { %624 = vmatpush.bf16.msra.mxu3 %v1024_v11  ;;  %v709_v34 = vld [vmem:[%s1330_s0 + $0x8] sm:$0xf]  ;;  %v701_v36 = vld [vmem:[%s1330_s0] sm:$0xf]  ;;  %v988_v38 = vld [vmem:[%s1330_s0 + $0xc] sm:$0xf] }
   0xe   :  { %583 = vmatpush.bf16.msra.mxu0 %v999_v12  ;;  %v992_v35 = vld [vmem:[%s1330_s0 + $0x24] sm:$0xf0]  ;;  %v991_v37 = vld [vmem:[%s1330_s0 + $0x1c] sm:$0xf0]  ;;  %v711_v39 = vld [vmem:[%s1330_s0 + $0x28] sm:$0xf0] }
   0xf   :  { %597 = vmatpush.bf16.msra.mxu1 %v1007_v13  ;;  %v987_v40 = vld [vmem:[%s1330_s0 + $0x4] sm:$0xf]  ;;  %v710_v44 = vor.u32 %v992_v35, %v709_v34  ;;  %v702_v45 = vor.u32 %v991_v37, %v701_v36  ;;  %v714_v46 = vor.u32 %v988_v38, %v711_v39  ;;  %v1033_v48 = vld [vmem:[%s1329_s1 + $0x130] sm:$0xff]  ;;  %v1032_v53 = vld [vmem:[%s1329_s1 + $0x128] sm:$0xff] }
  0x10   :  { %611 = vmatpush.bf16.msra.mxu2 %v1015_v14  ;;  %v703_v41 = vld [vmem:[%s1330_s0 + $0x20] sm:$0xf0]  ;;  %v1041_v49 = vld [vmem:[%s1329_s1 + $0x170] sm:$0xff]  ;;  %v1040_v54 = vld [vmem:[%s1329_s1 + $0x168] sm:$0xff] }
  0x11   :  { %625 = vmatpush.bf16.msra.mxu3 %v1023_v15  ;;  %v706_v47 = vor.u32 %v987_v40, %v703_v41  ;;  %v1049_v51 = vld [vmem:[%s1329_s1 + $0x1b0] sm:$0xff]  ;;  %v1048_v55 = vld [vmem:[%s1329_s1 + $0x1a8] sm:$0xff]  ;;  %v1031_v57 = vld [vmem:[%s1329_s1 + $0x120] sm:$0xff] }
  0x12   :  { %584 = vmatpush.bf16.msra.mxu0 %v998_v16  ;;  %v1057_v52 = vld [vmem:[%s1329_s1 + $0x1f0] sm:$0xff]  ;;  %v1056_v56 = vld [vmem:[%s1329_s1 + $0x1e8] sm:$0xff]  ;;  %v1039_v58 = vld [vmem:[%s1329_s1 + $0x160] sm:$0xff] }
  0x13   :  { %598 = vmatpush.bf16.msra.mxu1 %v1006_v17  ;;  %v1047_v59 = vld [vmem:[%s1329_s1 + $0x1a0] sm:$0xff]  ;;  %v1030_v61 = vld [vmem:[%s1329_s1 + $0x118] sm:$0xff]  ;;  %v1029_v1 = vld [vmem:[%s1329_s1 + $0x110] sm:$0xff] }
  0x14   :  { %612 = vmatpush.bf16.msra.mxu2 %v1014_v18  ;;  %v1055_v60 = vld [vmem:[%s1329_s1 + $0x1e0] sm:$0xff]  ;;  %v1038_v62 = vld [vmem:[%s1329_s1 + $0x158] sm:$0xff]  ;;  %v1037_v2 = vld [vmem:[%s1329_s1 + $0x150] sm:$0xff] }
  0x15   :  { %626 = vmatpush.bf16.msra.mxu3 %v1022_v19  ;;  %v1046_v63 = vld [vmem:[%s1329_s1 + $0x198] sm:$0xff]  ;;  %v1045_v3 = vld [vmem:[%s1329_s1 + $0x190] sm:$0xff]  ;;  %v1028_v5 = vld [vmem:[%s1329_s1 + $0x108] sm:$0xff] }
  0x16   :  { %585 = vmatpush.bf16.msra.mxu0 %v997_v20  ;;  %v1054_v0 = vld [vmem:[%s1329_s1 + $0x1d8] sm:$0xff]  ;;  %v1053_v4 = vld [vmem:[%s1329_s1 + $0x1d0] sm:$0xff]  ;;  %v1036_v6 = vld [vmem:[%s1329_s1 + $0x148] sm:$0xff] }
  0x17   :  { %599 = vmatpush.bf16.msra.mxu1 %v1005_v21  ;;  %v1044_v7 = vld [vmem:[%s1329_s1 + $0x188] sm:$0xff]  ;;  %v1027_v9 = vld [vmem:[%s1329_s1 + $0x100] sm:$0xff]  ;;  %v717_v13 = vld [vmem:[%s1330_s0 + $0x10] sm:$0xf] }
  0x18   :  { %613 = vmatpush.bf16.msra.mxu2 %v1013_v22  ;;  %v1052_v8 = vld [vmem:[%s1329_s1 + $0x1c8] sm:$0xff]  ;;  %v1035_v10 = vld [vmem:[%s1329_s1 + $0x140] sm:$0xff]  ;;  %v993_v14 = vld [vmem:[%s1330_s0 + $0x2c] sm:$0xf0] }
  0x19   :  { %627 = vmatpush.bf16.msra.mxu3 %v1021_v23  ;;  %v1043_v11 = vld [vmem:[%s1329_s1 + $0x180] sm:$0xff]  ;;  %v989_v15 = vld [vmem:[%s1330_s0 + $0x14] sm:$0xf]  ;;  %v725_v17 = vld [vmem:[%s1330_s0 + $0x18] sm:$0xf]  ;;  %v718_v21 = vor.u32 %v993_v14, %v717_v13 }
  0x1a   :  { %586 = vmatpush.bf16.msra.mxu0 %v996_v24  ;;  %v1051_v12 = vld [vmem:[%s1329_s1 + $0x1c0] sm:$0xff]  ;;  %v719_v16 = vld [vmem:[%s1330_s0 + $0x30] sm:$0xf0]  ;;  %v994_v18 = vld [vmem:[%s1330_s0 + $0x34] sm:$0xf0] }
  0x1b   :  { %600 = vmatpush.bf16.msra.mxu1 %v1004_v25  ;;  %v990_v19 = vld [vmem:[%s1330_s0 + $0x1c] sm:$0xf]  ;;  %v722_v22 = vor.u32 %v989_v15, %v719_v16  ;;  %v726_v23 = vor.u32 %v994_v18, %v725_v17 }
  0x1c   :  { %614 = vmatpush.bf16.msra.mxu2 %v1012_v26  ;;  %v727_v20 = vld [vmem:[%s1330_s0 + $0x38] sm:$0xf0]  ;;  %v1059_v26 = vld [vmem:[#allocation2] ss:$0 sm:$0xff] }
  0x1d   :  { %628 = vmatpush.bf16.msra.mxu3 %v1020_v27  ;;  %v730_v24 = vor.u32 %v990_v19, %v727_v20 }
  0x1e   :  { %587 = vmatpush.bf16.msra.mxu0 %v995_v28 }
  0x1f   :  { %601 = vmatpush.bf16.msra.mxu1 %v1003_v29 }
  0x20   :  { %615 = vmatpush.bf16.msra.mxu2 %v1011_v30 }
  0x21   :  { %629 = vmatpush.bf16.msra.mxu3 %v1019_v31  ;;  %588 = vmatmul.bf16.vlgmr.msra.gmra.mxu0 %v702_v45 }
  0x22   :  { %636 = vmatpush.bf16.msrb.mxu0 %v1034_v32  ;;  %602 = vmatmul.bf16.vlgmr.msra.gmra.mxu1 %v706_v47 }
  0x23   :  { %650 = vmatpush.bf16.msrb.mxu1 %v1042_v33  ;;  %616 = vmatmul.bf16.vlgmr.msra.gmra.mxu2 %v710_v44 }
  0x24   :  { %664 = vmatpush.bf16.msrb.mxu2 %v1050_v42  ;;  %630 = vmatmul.bf16.vlgmr.msra.gmra.mxu3 %v714_v46 }
  0x25   :  { %678 = vmatpush.bf16.msrb.mxu3 %v1058_v43 }
  0x26   :  { %637 = vmatpush.bf16.msrb.mxu0 %v1033_v48 }
  0x27   :  { %651 = vmatpush.bf16.msrb.mxu1 %v1041_v49 }
  0x28   :  { %665 = vmatpush.bf16.msrb.mxu2 %v1049_v51 }
  0x29   :  { %679 = vmatpush.bf16.msrb.mxu3 %v1057_v52 }
  0x2a   :  { %638 = vmatpush.bf16.msrb.mxu0 %v1032_v53 }
  0x2b   :  { %652 = vmatpush.bf16.msrb.mxu1 %v1040_v54 }
  0x2c   :  { %666 = vmatpush.bf16.msrb.mxu2 %v1048_v55 }
  0x2d   :  { %680 = vmatpush.bf16.msrb.mxu3 %v1056_v56 }
  0x2e   :  { %639 = vmatpush.bf16.msrb.mxu0 %v1031_v57 }
  0x2f   :  { %653 = vmatpush.bf16.msrb.mxu1 %v1039_v58 }
  0x30   :  { %667 = vmatpush.bf16.msrb.mxu2 %v1047_v59 }
  0x31   :  { %681 = vmatpush.bf16.msrb.mxu3 %v1055_v60 }
  0x32   :  { %640 = vmatpush.bf16.msrb.mxu0 %v1030_v61 }
  0x33   :  { %654 = vmatpush.bf16.msrb.mxu1 %v1038_v62 }
  0x34   :  { %668 = vmatpush.bf16.msrb.mxu2 %v1046_v63 }
  0x35   :  { %682 = vmatpush.bf16.msrb.mxu3 %v1054_v0 }
  0x36   :  { %641 = vmatpush.bf16.msrb.mxu0 %v1029_v1 }
  0x37   :  { %655 = vmatpush.bf16.msrb.mxu1 %v1037_v2 }
  0x38   :  { %669 = vmatpush.bf16.msrb.mxu2 %v1045_v3 }
  0x39   :  { %683 = vmatpush.bf16.msrb.mxu3 %v1053_v4 }
  0x3a   :  { %642 = vmatpush.bf16.msrb.mxu0 %v1028_v5 }
  0x3b   :  { %656 = vmatpush.bf16.msrb.mxu1 %v1036_v6 }
  0x3c   :  { %670 = vmatpush.bf16.msrb.mxu2 %v1044_v7 }
  0x3d   :  { %684 = vmatpush.bf16.msrb.mxu3 %v1052_v8 }
  0x3e   :  { %643 = vmatpush.bf16.msrb.mxu0 %v1027_v9 }
  0x3f   :  { %657 = vmatpush.bf16.msrb.mxu1 %v1035_v10 }
  0x40   :  { %671 = vmatpush.bf16.msrb.mxu2 %v1043_v11 }
  0x41   :  { %685 = vmatpush.bf16.msrb.mxu3 %v1051_v12  ;;  %644 = vmatmul.bf16.vlgmr.msrb.gmra.mxu0 %v718_v21 }
  0x42   :  { %658 = vmatmul.bf16.vlgmr.msrb.gmra.mxu1 %v722_v22 }
  0x43   :  { %672 = vmatmul.bf16.vlgmr.msrb.gmra.mxu2 %v726_v23 }
  0x44   :  { %686 = vmatmul.bf16.vlgmr.msrb.gmra.mxu3 %v730_v24 }
  0x9e   :  { %v589_v25 = vpop.f32.mrf.mxu0 }
  0x9f   :  { %v603_v27 = vpop.f32.mrf.mxu1  ;;  %v590_v28 = vadd.f32 %v1059_v26, %v589_v25 }
  0xa1   :  { %v604_v31 = vadd.f32 %v603_v27, %v590_v28 }
  0xa6   :  { %v617_v29 = vpop.f32.mrf.mxu2  ;;  %v591_v32 = vpop.f32.mrf.mxu0 }
  0xa7   :  { %v631_v30 = vpop.f32.mrf.mxu3  ;;  %v605_v33 = vpop.f32.mrf.mxu1  ;;  %v618_v34 = vadd.f32 %v617_v29, %v604_v31  ;;  %v592_v35 = vadd.f32 %v1059_v26, %v591_v32 }
  0xa9   :  { %v632_v38 = vadd.f32 %v631_v30, %v618_v34  ;;  %v606_v39 = vadd.f32 %v605_v33, %v592_v35 }
  0xae   :  { %v619_v36 = vpop.f32.mrf.mxu2 }
  0xaf   :  { %v633_v37 = vpop.f32.mrf.mxu3  ;;  %v620_v43 = vadd.f32 %v619_v36, %v606_v39 }
  0xb1   :  { %v634_v47 = vadd.f32 %v633_v37, %v620_v43 }
  0xbe   :  { %v645_v40 = vpop.f32.mrf.mxu0 }
  0xbf   :  { %v646_v41 = vadd.f32 %v645_v40, %v632_v38  ;;  %v659_v42 = vpop.f32.mrf.mxu1 }
  0xc1   :  { %v660_v44 = vadd.f32 %v659_v42, %v646_v41 }
  0xc6   :  { %v673_v45 = vpop.f32.mrf.mxu2  ;;  %v647_v49 = vpop.f32.mrf.mxu0 }
  0xc7   :  { %v687_v46 = vpop.f32.mrf.mxu3  ;;  %v674_v48 = vadd.f32 %v673_v45, %v660_v44  ;;  %v648_v51 = vadd.f32 %v647_v49, %v634_v47  ;;  %v661_v52 = vpop.f32.mrf.mxu1 }
  0xc9   :  { %v688_v50 = vadd.f32 %v687_v46, %v674_v48  ;;  %v662_v53 = vadd.f32 %v661_v52, %v648_v51 }
  0xcb   :  { %693 = vst.msk [vmem:[%s1332_s3] sm:$0xff] %vm692_vm0, %v688_v50 }
  0xce   :  { %v675_v54 = vpop.f32.mrf.mxu2 }
  0xcf   :  { %v676_v55 = vadd.f32 %v675_v54, %v662_v53  ;;  %v689_v56 = vpop.f32.mrf.mxu3 }
  0xd1   :  { %v690_v57 = vadd.f32 %v689_v56, %v676_v55 }
  0xd3   :  { %694 = vst.msk [vmem:[%s1332_s3 + $0x8] sm:$0xff] %vm692_vm0, %v690_v57 }

</bundles_post_ra>
